<compile_context>
chip_gen: v6e
topology: v6e:2x2x1
jax: 0.10.0
libtpu: 0.0.40
codegen_flags: <defaults>
</compile_context>

<pallas_src>
import jax
import jax.numpy as jnp
from jax.experimental import pallas as pl
from jax.experimental.pallas import tpu as pltpu

EPS = 1e-6  # LayerNorm eps used by MetaFormer downsample norms


def _round_up(v, m):
    return -(-v // m) * m


def downsample(x, params):
    """Pallas TPU forward of Downsample: x -> LayerNorm2d(x) -> Conv2d(k3, s2, p1)."""
    B, C_in, H, W = x.shape
    C_out = params["conv_w"].shape[0]
    assert H % 2 == 0 and W % 2 == 0, "stage downsample expects even H, W"
    Ho, Wo = H // 2, W // 2
    N = Ho * Wo
    dt = x.dtype

    # Channels padded to a multiple of 16 so bf16 tap-slab stores stay (16,128)-tile aligned.
    Cp = _round_up(C_in, 16)

    # Fold samples into the lane axis until the lane dim is >= 128 (lane-dense stores and
    # a full MXU N dimension at deep stages where Ho*Wo < 128).
    # TODO(synk): when B // Bt == 1 a v7x chip only uses one of its two TensorCores; a
    # row-block grid axis (with a one-row halo for the r=1 phases) would restore 2-way use.
    Bt = B
    for d in range(1, B + 1):
        if B % d == 0 and d * N >= 128:
            Bt = d
            break
    Bg = B // Bt
    Lt = Bt * N

    # ---------------- wrapper-side layout plumbing (kept in the model dtype) ----------------
    # Space-to-depth: phase p = 2*r + s, xp[g, p, c, s_b*N + i*Wo + j] = x[g*Bt+s_b, c, 2i+r, 2j+s]
    # TODO(synk): if this transpose does not fuse with x's producer it costs one extra HBM
    # round trip; moving the phase split in-kernel needs memory_space=pl.ANY + strided DMAs.
    xp = x.reshape(B, C_in, Ho, 2, Wo, 2)
    xp = jnp.transpose(xp, (0, 3, 5, 1, 2, 4)).reshape(B, 4, C_in, N)
    xp = xp.reshape(Bg, Bt, 4, C_in, N)
    xp = jnp.transpose(xp, (0, 2, 3, 1, 4)).reshape(Bg, 4, C_in, Lt)
    if Cp > C_in:
        xp = jnp.pad(xp, ((0, 0), (0, 0), (0, Cp - C_in), (0, 0)))

    # Fused tap-major weight: wf[o, t*Cp + c] = conv_w[o, c, kh, kw], tap t = 3*kh + kw.
    w9 = jnp.transpose(params["conv_w"].astype(jnp.float32), (2, 3, 0, 1)).reshape(9, C_out, C_in)
    if Cp > C_in:
        w9 = jnp.pad(w9, ((0, 0), (0, 0), (0, Cp - C_in)))
    wf = jnp.transpose(w9, (1, 0, 2)).reshape(C_out, 9 * Cp).astype(jnp.bfloat16)

    cbias = params["conv_b"].reshape(C_out, 1).astype(jnp.float32)

    # Packed norm affine params: column 0 = gamma, column 1 = beta (zero on padded channels).
    nwb = jnp.stack([params["norm_w"], params["norm_b"]], axis=1).astype(jnp.float32)
    if Cp > C_in:
        nwb = jnp.pad(nwb, ((0, Cp - C_in), (0, 0)))

    # Shift masks, periodic per folded sample: row 0 kills columns with j == 0 after a +1
    # lane roll, row 1 kills rows with i == 0 after a +Wo lane roll (also kills wrap-around
    # and cross-sample leakage from the rolls).
    idx = jnp.arange(Lt)
    colmask = (idx % Wo != 0).astype(jnp.float32)
    rowmask = ((idx % N) >= Wo).astype(jnp.float32)
    masks = jnp.stack([colmask, rowmask], axis=0)  # (2, Lt)

    inv_c = float(1.0 / C_in)

    def kernel(xp_ref, nwb_ref, wf_ref, b_ref, m_ref, o_ref, slab_ref):
        gamma = nwb_ref[:, 0:1]          # (Cp, 1)
        beta = nwb_ref[:, 1:2]           # (Cp, 1)
        cmask = m_ref[0:1, :]            # (1, Lt)
        rmask = m_ref[1:2, :]            # (1, Lt)

        def layer_norm_c(v):
            # Per-pixel LayerNorm over the channel axis, one-pass stats in f32. Padded
            # channels are zero with gamma = beta = 0, so dividing by the true C_in keeps
            # the statistics exact and the padded channels normalize to 0.
            v = v.astype(jnp.float32)
            mu = jnp.sum(v, axis=0, keepdims=True) * inv_c
            ex2 = jnp.sum(v * v, axis=0, keepdims=True) * inv_c
            var = ex2 - mu * mu
            return (v - mu) * jax.lax.rsqrt(var + EPS) * gamma + beta

        # Normalized stride-2 phases, each (Cp, Lt); phase p = 2*r + s holds
        # norm(x)[c, 2i+r, 2j+s] at lane s_b*N + i*Wo + j.
        n00 = layer_norm_c(xp_ref[0])
        n01 = layer_norm_c(xp_ref[1])
        n10 = layer_norm_c(xp_ref[2])
        n11 = layer_norm_c(xp_ref[3])

        def shift_right(t):              # T[.., i, j] = t[.., i, j-1], zero at j == 0
            return pltpu.roll(t, shift=1, axis=1) * cmask

        def shift_down(t):               # T[.., i, j] = t[.., i-1, j], zero at i == 0
            return pltpu.roll(t, shift=Wo, axis=1) * rmask

        n01_r = shift_right(n01)
        n11_r = shift_right(n11)

        def put(t_idx, tap):             # write tap t into K rows [t*Cp, (t+1)*Cp)
            slab_ref[t_idx * Cp:(t_idx + 1) * Cp, :] = tap.astype(jnp.bfloat16)

        # out[o, i, j] = sum_{kh,kw,c} w[o,c,kh,kw] * pad(norm(x))[c, 2i+kh, 2j+kw];
        # tap t = 3*kh + kw maps to one (possibly shifted) phase.
        put(0, shift_down(n11_r))        # (kh=0, kw=0)
        put(1, shift_down(n10))          # (0, 1)
        put(2, shift_down(n11))          # (0, 2)
        put(3, n01_r)                    # (1, 0)
        put(4, n00)                      # (1, 1)
        put(5, n01)                      # (1, 2)
        put(6, n11_r)                    # (2, 0)
        put(7, n10)                      # (2, 1)
        put(8, n11)                      # (2, 2)

        # One fused MXU matmul over K = 9*Cp, bf16 operands, f32 accumulation.
        acc = jnp.dot(wf_ref[...], slab_ref[...], preferred_element_type=jnp.float32)
        o_ref[...] = (acc + b_ref[...]).astype(o_ref.dtype)

    cost = pl.CostEstimate(
        flops=int(2 * Bg * C_out * 9 * Cp * Lt + 12 * Bg * 4 * Cp * Lt),
        transcendentals=int(4 * Bg * Lt),
        bytes_accessed=int(xp.size * xp.dtype.itemsize + wf.size * wf.dtype.itemsize
                           + nwb.size * 4 + cbias.size * 4 + masks.size * 4
                           + Bg * C_out * Lt * jnp.dtype(dt).itemsize),
    )

    def build_and_run(const_mode):
        def cspec(shape):
            if const_mode is None:
                return pl.BlockSpec(shape, lambda b, _s=shape: (0,) * len(_s))
            return pl.BlockSpec(shape, lambda b, _s=shape: (0,) * len(_s),
                                pipeline_mode=const_mode)

        grid_spec = pltpu.PrefetchScalarGridSpec(
            num_scalar_prefetch=0,
            grid=(Bg,),
            in_specs=[
                # one group of Bt samples (4 phases) per grid step; last dim Lt is lane-dense
                pl.BlockSpec((None, 4, Cp, Lt), lambda b: (b, 0, 0, 0)),
                # constants / parameters: constant index maps -> VMEM-resident across steps
                cspec((Cp, 2)),
                cspec((C_out, 9 * Cp)),
                cspec((C_out, 1)),
                cspec((2, Lt)),
            ],
            out_specs=pl.BlockSpec((None, C_out, Lt), lambda b: (b, 0, 0)),
            scratch_shapes=[pltpu.VMEM((9 * Cp, Lt), jnp.bfloat16)],
        )
        return pl.pallas_call(
            kernel,
            out_shape=jax.ShapeDtypeStruct((Bg, C_out, Lt), dt),
            grid_spec=grid_spec,
            compiler_params=pltpu.CompilerParams(dimension_semantics=("parallel",)),
            cost_estimate=cost,
        )(xp, nwb, wf, cbias, masks)

    try:
        # Single-buffer the never-changing parameter blocks (saves VMEM at deep stages).
        out = build_and_run(pl.Buffered(1))
    except Exception:
        # Fallback: default double buffering (functionally identical).
        out = build_and_run(None)

    # Un-fold the batch tiling and restore (B, C_out, Ho, Wo).
    out = out.reshape(Bg, C_out, Bt, Ho, Wo)
    out = jnp.transpose(out, (0, 2, 1, 3, 4)).reshape(B, C_out, Ho, Wo)
    return out


def ref_forward(x, params):
    """Pure-JAX reference of the same forward pass (for correctness checking)."""
    mu = x.mean(axis=1, keepdims=True)
    var = jnp.square(x - mu).mean(axis=1, keepdims=True)
    xn = (x - mu) * jax.lax.rsqrt(var + EPS)
    xn = xn * params["norm_w"][None, :, None, None] + params["norm_b"][None, :, None, None]
    out = jax.lax.conv_general_dilated(
        xn, params["conv_w"], window_strides=(2, 2), padding=((1, 1), (1, 1)),
        dimension_numbers=("NCHW", "OIHW", "NCHW"),
        precision=jax.lax.Precision.HIGHEST)
    return out + params["conv_b"][None, :, None, None]


if __name__ == "__main__":
    key = jax.random.PRNGKey(0)
    k_x, k_nw, k_nb, k_cw, k_cb = jax.random.split(key, 5)

    B, C_in, C_out, H, W = 2, 4, 8, 16, 16

    x = jax.random.normal(k_x, (B, C_in, H, W), dtype=jnp.float32)
    params = dict(
        # LayerNorm2d affine params
        norm_w=1.0 + 0.1 * jax.random.normal(k_nw, (C_in,), jnp.float32),
        norm_b=0.05 * jax.random.normal(k_nb, (C_in,), jnp.float32),
        # Conv2d(C_in -> C_out, k=3, s=2, p=1) weight + bias
        conv_w=jax.random.normal(k_cw, (C_out, C_in, 3, 3), jnp.float32)
        / jnp.sqrt(9.0 * C_in),
        conv_b=0.1 * jax.random.normal(k_cb, (C_out,), jnp.float32),
    )

    out = jax.block_until_ready(downsample(x, params))
    ref = jax.block_until_ready(ref_forward(x, params))

    assert out.shape == (B, C_out, H // 2, W // 2) and out.dtype == jnp.float32
    max_err = float(jnp.max(jnp.abs(out - ref)))
    # Tolerance accounts for bf16 MXU operands with f32 accumulation in the conv path.
    if not bool(jnp.allclose(out, ref, atol=2e-2, rtol=2e-2)):
        raise AssertionError(f"Pallas kernel mismatch vs JAX reference, max abs err={max_err}")
    print("KERNEL_OK")
</pallas_src>

<mosaic_0001>
module attributes {stable_mosaic.version = 11 : i64} {
  func.func @kernel(%arg0: i32, %arg1: memref<1x4x16x128xf32, #tpu.memory_space<vmem>>, %arg2: memref<16x2xf32, #tpu.memory_space<vmem>>, %arg3: memref<8x144xbf16, #tpu.memory_space<vmem>>, %arg4: memref<8x1xf32, #tpu.memory_space<vmem>>, %arg5: memref<2x128xf32, #tpu.memory_space<vmem>>, %arg6: memref<1x8x128xf32, #tpu.memory_space<vmem>>, %arg7: memref<144x128xbf16, #tpu.memory_space<vmem>>) attributes {dimension_semantics = [#tpu.dimension_semantics<parallel>], iteration_bounds = array<i64: 1>, scalar_prefetch = 0 : i64, scratch_operands = 1 : i64, tpu.core_type = #tpu.core_type<tc>, window_params = [{transform_indices = @transform_0, window_bounds = array<i64: 1, 4, 16, 128>}, {pipeline_mode = #tpu.pipeline_mode<synchronous>, transform_indices = @transform_1, window_bounds = array<i64: 16, 2>}, {pipeline_mode = #tpu.pipeline_mode<synchronous>, transform_indices = @transform_2, window_bounds = array<i64: 8, 144>}, {pipeline_mode = #tpu.pipeline_mode<synchronous>, transform_indices = @transform_3, window_bounds = array<i64: 8, 1>}, {pipeline_mode = #tpu.pipeline_mode<synchronous>, transform_indices = @transform_4, window_bounds = array<i64: 2, 128>}, {transform_indices = @transform_5, window_bounds = array<i64: 1, 8, 128>}]} {
    %c0 = arith.constant 0 : index
    %c0_0 = arith.constant 0 : index
    %0 = vector.load %arg2[%c0, %c0_0] : memref<16x2xf32, #tpu.memory_space<vmem>>, vector<16x1xf32>
    %c0_1 = arith.constant 0 : index
    %c1 = arith.constant 1 : index
    %1 = vector.load %arg2[%c0_1, %c1] : memref<16x2xf32, #tpu.memory_space<vmem>>, vector<16x1xf32>
    %c0_2 = arith.constant 0 : index
    %c0_3 = arith.constant 0 : index
    %2 = vector.load %arg5[%c0_2, %c0_3] : memref<2x128xf32, #tpu.memory_space<vmem>>, vector<1x128xf32>
    %c1_4 = arith.constant 1 : index
    %c0_5 = arith.constant 0 : index
    %3 = vector.load %arg5[%c1_4, %c0_5] : memref<2x128xf32, #tpu.memory_space<vmem>>, vector<1x128xf32>
    %c0_6 = arith.constant 0 : index
    %c0_7 = arith.constant 0 : index
    %c0_8 = arith.constant 0 : index
    %c0_9 = arith.constant 0 : index
    %4 = vector.load %arg1[%c0_6, %c0_7, %c0_8, %c0_9] : memref<1x4x16x128xf32, #tpu.memory_space<vmem>>, vector<1x1x16x128xf32>
    %5 = vector.shape_cast %4 : vector<1x1x16x128xf32> to vector<16x128xf32>
    %cst = arith.constant dense<0.000000e+00> : vector<128xf32>
    %6 = vector.multi_reduction <add>, %5, %cst [0] : vector<16x128xf32> to vector<128xf32>
    %7 = vector.shape_cast %6 : vector<128xf32> to vector<1x128xf32>
    %cst_10 = arith.constant 2.500000e-01 : f32
    %8 = vector.broadcast %cst_10 : f32 to vector<1x128xf32>
    %9 = arith.mulf %7, %8 : vector<1x128xf32>
    %10 = arith.mulf %5, %5 : vector<16x128xf32>
    %cst_11 = arith.constant dense<0.000000e+00> : vector<128xf32>
    %11 = vector.multi_reduction <add>, %10, %cst_11 [0] : vector<16x128xf32> to vector<128xf32>
    %12 = vector.shape_cast %11 : vector<128xf32> to vector<1x128xf32>
    %cst_12 = arith.constant 2.500000e-01 : f32
    %13 = vector.broadcast %cst_12 : f32 to vector<1x128xf32>
    %14 = arith.mulf %12, %13 : vector<1x128xf32>
    %15 = arith.mulf %9, %9 : vector<1x128xf32>
    %16 = arith.subf %14, %15 : vector<1x128xf32>
    %17 = vector.broadcast %9 : vector<1x128xf32> to vector<16x128xf32>
    %18 = arith.subf %5, %17 : vector<16x128xf32>
    %cst_13 = arith.constant 9.99999997E-7 : f32
    %19 = vector.broadcast %cst_13 : f32 to vector<1x128xf32>
    %20 = arith.addf %16, %19 : vector<1x128xf32>
    %21 = math.rsqrt %20 : vector<1x128xf32>
    %22 = vector.broadcast %21 : vector<1x128xf32> to vector<16x128xf32>
    %23 = arith.mulf %18, %22 : vector<16x128xf32>
    %24 = vector.broadcast %0 : vector<16x1xf32> to vector<16x128xf32>
    %25 = arith.mulf %23, %24 : vector<16x128xf32>
    %26 = vector.broadcast %1 : vector<16x1xf32> to vector<16x128xf32>
    %27 = arith.addf %25, %26 : vector<16x128xf32>
    %c0_14 = arith.constant 0 : index
    %c1_15 = arith.constant 1 : index
    %c0_16 = arith.constant 0 : index
    %c0_17 = arith.constant 0 : index
    %28 = vector.load %arg1[%c0_14, %c1_15, %c0_16, %c0_17] : memref<1x4x16x128xf32, #tpu.memory_space<vmem>>, vector<1x1x16x128xf32>
    %29 = vector.shape_cast %28 : vector<1x1x16x128xf32> to vector<16x128xf32>
    %cst_18 = arith.constant dense<0.000000e+00> : vector<128xf32>
    %30 = vector.multi_reduction <add>, %29, %cst_18 [0] : vector<16x128xf32> to vector<128xf32>
    %31 = vector.shape_cast %30 : vector<128xf32> to vector<1x128xf32>
    %cst_19 = arith.constant 2.500000e-01 : f32
    %32 = vector.broadcast %cst_19 : f32 to vector<1x128xf32>
    %33 = arith.mulf %31, %32 : vector<1x128xf32>
    %34 = arith.mulf %29, %29 : vector<16x128xf32>
    %cst_20 = arith.constant dense<0.000000e+00> : vector<128xf32>
    %35 = vector.multi_reduction <add>, %34, %cst_20 [0] : vector<16x128xf32> to vector<128xf32>
    %36 = vector.shape_cast %35 : vector<128xf32> to vector<1x128xf32>
    %cst_21 = arith.constant 2.500000e-01 : f32
    %37 = vector.broadcast %cst_21 : f32 to vector<1x128xf32>
    %38 = arith.mulf %36, %37 : vector<1x128xf32>
    %39 = arith.mulf %33, %33 : vector<1x128xf32>
    %40 = arith.subf %38, %39 : vector<1x128xf32>
    %41 = vector.broadcast %33 : vector<1x128xf32> to vector<16x128xf32>
    %42 = arith.subf %29, %41 : vector<16x128xf32>
    %cst_22 = arith.constant 9.99999997E-7 : f32
    %43 = vector.broadcast %cst_22 : f32 to vector<1x128xf32>
    %44 = arith.addf %40, %43 : vector<1x128xf32>
    %45 = math.rsqrt %44 : vector<1x128xf32>
    %46 = vector.broadcast %45 : vector<1x128xf32> to vector<16x128xf32>
    %47 = arith.mulf %42, %46 : vector<16x128xf32>
    %48 = vector.broadcast %0 : vector<16x1xf32> to vector<16x128xf32>
    %49 = arith.mulf %47, %48 : vector<16x128xf32>
    %50 = vector.broadcast %1 : vector<16x1xf32> to vector<16x128xf32>
    %51 = arith.addf %49, %50 : vector<16x128xf32>
    %c0_23 = arith.constant 0 : index
    %c2 = arith.constant 2 : index
    %c0_24 = arith.constant 0 : index
    %c0_25 = arith.constant 0 : index
    %52 = vector.load %arg1[%c0_23, %c2, %c0_24, %c0_25] : memref<1x4x16x128xf32, #tpu.memory_space<vmem>>, vector<1x1x16x128xf32>
    %53 = vector.shape_cast %52 : vector<1x1x16x128xf32> to vector<16x128xf32>
    %cst_26 = arith.constant dense<0.000000e+00> : vector<128xf32>
    %54 = vector.multi_reduction <add>, %53, %cst_26 [0] : vector<16x128xf32> to vector<128xf32>
    %55 = vector.shape_cast %54 : vector<128xf32> to vector<1x128xf32>
    %cst_27 = arith.constant 2.500000e-01 : f32
    %56 = vector.broadcast %cst_27 : f32 to vector<1x128xf32>
    %57 = arith.mulf %55, %56 : vector<1x128xf32>
    %58 = arith.mulf %53, %53 : vector<16x128xf32>
    %cst_28 = arith.constant dense<0.000000e+00> : vector<128xf32>
    %59 = vector.multi_reduction <add>, %58, %cst_28 [0] : vector<16x128xf32> to vector<128xf32>
    %60 = vector.shape_cast %59 : vector<128xf32> to vector<1x128xf32>
    %cst_29 = arith.constant 2.500000e-01 : f32
    %61 = vector.broadcast %cst_29 : f32 to vector<1x128xf32>
    %62 = arith.mulf %60, %61 : vector<1x128xf32>
    %63 = arith.mulf %57, %57 : vector<1x128xf32>
    %64 = arith.subf %62, %63 : vector<1x128xf32>
    %65 = vector.broadcast %57 : vector<1x128xf32> to vector<16x128xf32>
    %66 = arith.subf %53, %65 : vector<16x128xf32>
    %cst_30 = arith.constant 9.99999997E-7 : f32
    %67 = vector.broadcast %cst_30 : f32 to vector<1x128xf32>
    %68 = arith.addf %64, %67 : vector<1x128xf32>
    %69 = math.rsqrt %68 : vector<1x128xf32>
    %70 = vector.broadcast %69 : vector<1x128xf32> to vector<16x128xf32>
    %71 = arith.mulf %66, %70 : vector<16x128xf32>
    %72 = vector.broadcast %0 : vector<16x1xf32> to vector<16x128xf32>
    %73 = arith.mulf %71, %72 : vector<16x128xf32>
    %74 = vector.broadcast %1 : vector<16x1xf32> to vector<16x128xf32>
    %75 = arith.addf %73, %74 : vector<16x128xf32>
    %c0_31 = arith.constant 0 : index
    %c3 = arith.constant 3 : index
    %c0_32 = arith.constant 0 : index
    %c0_33 = arith.constant 0 : index
    %76 = vector.load %arg1[%c0_31, %c3, %c0_32, %c0_33] : memref<1x4x16x128xf32, #tpu.memory_space<vmem>>, vector<1x1x16x128xf32>
    %77 = vector.shape_cast %76 : vector<1x1x16x128xf32> to vector<16x128xf32>
    %cst_34 = arith.constant dense<0.000000e+00> : vector<128xf32>
    %78 = vector.multi_reduction <add>, %77, %cst_34 [0] : vector<16x128xf32> to vector<128xf32>
    %79 = vector.shape_cast %78 : vector<128xf32> to vector<1x128xf32>
    %cst_35 = arith.constant 2.500000e-01 : f32
    %80 = vector.broadcast %cst_35 : f32 to vector<1x128xf32>
    %81 = arith.mulf %79, %80 : vector<1x128xf32>
    %82 = arith.mulf %77, %77 : vector<16x128xf32>
    %cst_36 = arith.constant dense<0.000000e+00> : vector<128xf32>
    %83 = vector.multi_reduction <add>, %82, %cst_36 [0] : vector<16x128xf32> to vector<128xf32>
    %84 = vector.shape_cast %83 : vector<128xf32> to vector<1x128xf32>
    %cst_37 = arith.constant 2.500000e-01 : f32
    %85 = vector.broadcast %cst_37 : f32 to vector<1x128xf32>
    %86 = arith.mulf %84, %85 : vector<1x128xf32>
    %87 = arith.mulf %81, %81 : vector<1x128xf32>
    %88 = arith.subf %86, %87 : vector<1x128xf32>
    %89 = vector.broadcast %81 : vector<1x128xf32> to vector<16x128xf32>
    %90 = arith.subf %77, %89 : vector<16x128xf32>
    %cst_38 = arith.constant 9.99999997E-7 : f32
    %91 = vector.broadcast %cst_38 : f32 to vector<1x128xf32>
    %92 = arith.addf %88, %91 : vector<1x128xf32>
    %93 = math.rsqrt %92 : vector<1x128xf32>
    %94 = vector.broadcast %93 : vector<1x128xf32> to vector<16x128xf32>
    %95 = arith.mulf %90, %94 : vector<16x128xf32>
    %96 = vector.broadcast %0 : vector<16x1xf32> to vector<16x128xf32>
    %97 = arith.mulf %95, %96 : vector<16x128xf32>
    %98 = vector.broadcast %1 : vector<16x1xf32> to vector<16x128xf32>
    %99 = arith.addf %97, %98 : vector<16x128xf32>
    %c1_i32 = arith.constant 1 : i32
    %100 = tpu.dynamic_rotate %51 by %c1_i32 dim 1 : vector<16x128xf32>, i32 -> vector<16x128xf32>
    %101 = vector.broadcast %2 : vector<1x128xf32> to vector<16x128xf32>
    %102 = arith.mulf %100, %101 : vector<16x128xf32>
    %c1_i32_39 = arith.constant 1 : i32
    %103 = tpu.dynamic_rotate %99 by %c1_i32_39 dim 1 : vector<16x128xf32>, i32 -> vector<16x128xf32>
    %104 = vector.broadcast %2 : vector<1x128xf32> to vector<16x128xf32>
    %105 = arith.mulf %103, %104 : vector<16x128xf32>
    %c8_i32 = arith.constant 8 : i32
    %106 = tpu.dynamic_rotate %105 by %c8_i32 dim 1 : vector<16x128xf32>, i32 -> vector<16x128xf32>
    %107 = vector.broadcast %3 : vector<1x128xf32> to vector<16x128xf32>
    %108 = arith.mulf %106, %107 : vector<16x128xf32>
    %109 = arith.truncf %108 : vector<16x128xf32> to vector<16x128xbf16>
    %c0_40 = arith.constant 0 : index
    %c0_41 = arith.constant 0 : index
    %110 = vector.load %arg7[%c0_40, %c0_41] : memref<144x128xbf16, #tpu.memory_space<vmem>>, vector<16x128xbf16>
    tpu.vector_store %arg7[%c0_40, %c0_41], %109 {strides = array<i32>} : memref<144x128xbf16, #tpu.memory_space<vmem>>, vector<16x128xbf16>,
    %c8_i32_42 = arith.constant 8 : i32
    %111 = tpu.dynamic_rotate %75 by %c8_i32_42 dim 1 : vector<16x128xf32>, i32 -> vector<16x128xf32>
    %112 = vector.broadcast %3 : vector<1x128xf32> to vector<16x128xf32>
    %113 = arith.mulf %111, %112 : vector<16x128xf32>
    %114 = arith.truncf %113 : vector<16x128xf32> to vector<16x128xbf16>
    %c16 = arith.constant 16 : index
    %c0_43 = arith.constant 0 : index
    %115 = vector.load %arg7[%c16, %c0_43] : memref<144x128xbf16, #tpu.memory_space<vmem>>, vector<16x128xbf16>
    tpu.vector_store %arg7[%c16, %c0_43], %114 {strides = array<i32>} : memref<144x128xbf16, #tpu.memory_space<vmem>>, vector<16x128xbf16>,
    %c8_i32_44 = arith.constant 8 : i32
    %116 = tpu.dynamic_rotate %99 by %c8_i32_44 dim 1 : vector<16x128xf32>, i32 -> vector<16x128xf32>
    %117 = vector.broadcast %3 : vector<1x128xf32> to vector<16x128xf32>
    %118 = arith.mulf %116, %117 : vector<16x128xf32>
    %119 = arith.truncf %118 : vector<16x128xf32> to vector<16x128xbf16>
    %c32 = arith.constant 32 : index
    %c0_45 = arith.constant 0 : index
    %120 = vector.load %arg7[%c32, %c0_45] : memref<144x128xbf16, #tpu.memory_space<vmem>>, vector<16x128xbf16>
    tpu.vector_store %arg7[%c32, %c0_45], %119 {strides = array<i32>} : memref<144x128xbf16, #tpu.memory_space<vmem>>, vector<16x128xbf16>,
    %121 = arith.truncf %102 : vector<16x128xf32> to vector<16x128xbf16>
    %c48 = arith.constant 48 : index
    %c0_46 = arith.constant 0 : index
    %122 = vector.load %arg7[%c48, %c0_46] : memref<144x128xbf16, #tpu.memory_space<vmem>>, vector<16x128xbf16>
    tpu.vector_store %arg7[%c48, %c0_46], %121 {strides = array<i32>} : memref<144x128xbf16, #tpu.memory_space<vmem>>, vector<16x128xbf16>,
    %123 = arith.truncf %27 : vector<16x128xf32> to vector<16x128xbf16>
    %c64 = arith.constant 64 : index
    %c0_47 = arith.constant 0 : index
    %124 = vector.load %arg7[%c64, %c0_47] : memref<144x128xbf16, #tpu.memory_space<vmem>>, vector<16x128xbf16>
    tpu.vector_store %arg7[%c64, %c0_47], %123 {strides = array<i32>} : memref<144x128xbf16, #tpu.memory_space<vmem>>, vector<16x128xbf16>,
    %125 = arith.truncf %51 : vector<16x128xf32> to vector<16x128xbf16>
    %c80 = arith.constant 80 : index
    %c0_48 = arith.constant 0 : index
    %126 = vector.load %arg7[%c80, %c0_48] : memref<144x128xbf16, #tpu.memory_space<vmem>>, vector<16x128xbf16>
    tpu.vector_store %arg7[%c80, %c0_48], %125 {strides = array<i32>} : memref<144x128xbf16, #tpu.memory_space<vmem>>, vector<16x128xbf16>,
    %127 = arith.truncf %105 : vector<16x128xf32> to vector<16x128xbf16>
    %c96 = arith.constant 96 : index
    %c0_49 = arith.constant 0 : index
    %128 = vector.load %arg7[%c96, %c0_49] : memref<144x128xbf16, #tpu.memory_space<vmem>>, vector<16x128xbf16>
    tpu.vector_store %arg7[%c96, %c0_49], %127 {strides = array<i32>} : memref<144x128xbf16, #tpu.memory_space<vmem>>, vector<16x128xbf16>,
    %129 = arith.truncf %75 : vector<16x128xf32> to vector<16x128xbf16>
    %c112 = arith.constant 112 : index
    %c0_50 = arith.constant 0 : index
    %130 = vector.load %arg7[%c112, %c0_50] : memref<144x128xbf16, #tpu.memory_space<vmem>>, vector<16x128xbf16>
    tpu.vector_store %arg7[%c112, %c0_50], %129 {strides = array<i32>} : memref<144x128xbf16, #tpu.memory_space<vmem>>, vector<16x128xbf16>,
    %131 = arith.truncf %99 : vector<16x128xf32> to vector<16x128xbf16>
    %c128 = arith.constant 128 : index
    %c0_51 = arith.constant 0 : index
    %132 = vector.load %arg7[%c128, %c0_51] : memref<144x128xbf16, #tpu.memory_space<vmem>>, vector<16x128xbf16>
    tpu.vector_store %arg7[%c128, %c0_51], %131 {strides = array<i32>} : memref<144x128xbf16, #tpu.memory_space<vmem>>, vector<16x128xbf16>,
    %c0_52 = arith.constant 0 : index
    %c0_53 = arith.constant 0 : index
    %133 = vector.load %arg3[%c0_52, %c0_53] : memref<8x144xbf16, #tpu.memory_space<vmem>>, vector<8x144xbf16>
    %c0_54 = arith.constant 0 : index
    %c0_55 = arith.constant 0 : index
    %134 = vector.load %arg7[%c0_54, %c0_55] : memref<144x128xbf16, #tpu.memory_space<vmem>>, vector<144x128xbf16>
    %cst_56 = arith.constant dense<0.000000e+00> : vector<8x128xf32>
    %135 = tpu.matmul %133, %134, %cst_56 {dimension_numbers = #tpu.dot_dimension_numbers<[1], [0], [0], [1], [0, 0, 1, 1], [], []>} : vector<8x144xbf16>, vector<144x128xbf16>, vector<8x128xf32> -> vector<8x128xf32>
    %c0_57 = arith.constant 0 : index
    %c0_58 = arith.constant 0 : index
    %136 = vector.load %arg4[%c0_57, %c0_58] : memref<8x1xf32, #tpu.memory_space<vmem>>, vector<8x1xf32>
    %137 = vector.broadcast %136 : vector<8x1xf32> to vector<8x128xf32>
    %138 = arith.addf %135, %137 : vector<8x128xf32>
    %c0_59 = arith.constant 0 : index
    %c0_60 = arith.constant 0 : index
    %c0_61 = arith.constant 0 : index
    %139 = vector.load %arg6[%c0_59, %c0_60, %c0_61] : memref<1x8x128xf32, #tpu.memory_space<vmem>>, vector<1x8x128xf32>
    %140 = vector.shape_cast %139 : vector<1x8x128xf32> to vector<8x128xf32>
    %141 = vector.shape_cast %138 : vector<8x128xf32> to vector<1x8x128xf32>
    tpu.vector_store %arg6[%c0_59, %c0_60, %c0_61], %141 {strides = array<i32>} : memref<1x8x128xf32, #tpu.memory_space<vmem>>, vector<1x8x128xf32>,
    return
  }
  func.func @transform_0(%arg0: i32) -> (i32, i32, i32, i32) {
    %c0_i32 = arith.constant 0 : i32
    %c0_i32_0 = arith.constant 0 : i32
    %c0_i32_1 = arith.constant 0 : i32
    %c0_i32_2 = arith.constant 0 : i32
    return %arg0, %c0_i32, %c0_i32_0, %c0_i32_1 : i32, i32, i32, i32
  }
  func.func @transform_1(%arg0: i32) -> (i32, i32) {
    %c0_i32 = arith.constant 0 : i32
    %c0_i32_0 = arith.constant 0 : i32
    %c0_i32_1 = arith.constant 0 : i32
    return %c0_i32, %c0_i32_0 : i32, i32
  }
  func.func @transform_2(%arg0: i32) -> (i32, i32) {
    %c0_i32 = arith.constant 0 : i32
    %c0_i32_0 = arith.constant 0 : i32
    %c0_i32_1 = arith.constant 0 : i32
    return %c0_i32, %c0_i32_0 : i32, i32
  }
  func.func @transform_3(%arg0: i32) -> (i32, i32) {
    %c0_i32 = arith.constant 0 : i32
    %c0_i32_0 = arith.constant 0 : i32
    %c0_i32_1 = arith.constant 0 : i32
    return %c0_i32, %c0_i32_0 : i32, i32
  }
  func.func @transform_4(%arg0: i32) -> (i32, i32) {
    %c0_i32 = arith.constant 0 : i32
    %c0_i32_0 = arith.constant 0 : i32
    %c0_i32_1 = arith.constant 0 : i32
    return %c0_i32, %c0_i32_0 : i32, i32
  }
  func.func @transform_5(%arg0: i32) -> (i32, i32, i32) {
    %c0_i32 = arith.constant 0 : i32
    %c0_i32_0 = arith.constant 0 : i32
    %c0_i32_1 = arith.constant 0 : i32
    return %arg0, %c0_i32, %c0_i32_0 : i32, i32, i32
  }
}

module attributes {stable_mosaic.version = 11 : i64} {
  func.func @kernel(%arg0: i32, %arg1: memref<1x4x16x128xf32, #tpu.memory_space<vmem>>, %arg2: memref<16x2xf32, #tpu.memory_space<vmem>>, %arg3: memref<8x144xbf16, #tpu.memory_space<vmem>>, %arg4: memref<8x1xf32, #tpu.memory_space<vmem>>, %arg5: memref<2x128xf32, #tpu.memory_space<vmem>>, %arg6: memref<1x8x128xf32, #tpu.memory_space<vmem>>, %arg7: memref<144x128xbf16, #tpu.memory_space<vmem>>) attributes {dimension_semantics = [#tpu.dimension_semantics<parallel>], iteration_bounds = array<i64: 1>, scalar_prefetch = 0 : i64, scratch_operands = 1 : i64, tpu.core_type = #tpu.core_type<tc>, window_params = [{transform_indices = @transform_0, window_bounds = array<i64: 1, 4, 16, 128>}, {pipeline_mode = #tpu.pipeline_mode<synchronous>, transform_indices = @transform_1, window_bounds = array<i64: 16, 2>}, {pipeline_mode = #tpu.pipeline_mode<synchronous>, transform_indices = @transform_2, window_bounds = array<i64: 8, 144>}, {pipeline_mode = #tpu.pipeline_mode<synchronous>, transform_indices = @transform_3, window_bounds = array<i64: 8, 1>}, {pipeline_mode = #tpu.pipeline_mode<synchronous>, transform_indices = @transform_4, window_bounds = array<i64: 2, 128>}, {transform_indices = @transform_5, window_bounds = array<i64: 1, 8, 128>}]} {
    %c0 = arith.constant 0 : index
    %c0_0 = arith.constant 0 : index
    %0 = vector.load %arg2[%c0, %c0_0] : memref<16x2xf32, #tpu.memory_space<vmem>>, vector<16x1xf32>
    %c0_1 = arith.constant 0 : index
    %c1 = arith.constant 1 : index
    %1 = vector.load %arg2[%c0_1, %c1] : memref<16x2xf32, #tpu.memory_space<vmem>>, vector<16x1xf32>
    %c0_2 = arith.constant 0 : index
    %c0_3 = arith.constant 0 : index
    %2 = vector.load %arg5[%c0_2, %c0_3] : memref<2x128xf32, #tpu.memory_space<vmem>>, vector<1x128xf32>
    %c1_4 = arith.constant 1 : index
    %c0_5 = arith.constant 0 : index
    %3 = vector.load %arg5[%c1_4, %c0_5] : memref<2x128xf32, #tpu.memory_space<vmem>>, vector<1x128xf32>
    %c0_6 = arith.constant 0 : index
    %c0_7 = arith.constant 0 : index
    %c0_8 = arith.constant 0 : index
    %c0_9 = arith.constant 0 : index
    %4 = vector.load %arg1[%c0_6, %c0_7, %c0_8, %c0_9] : memref<1x4x16x128xf32, #tpu.memory_space<vmem>>, vector<1x1x16x128xf32>
    %5 = vector.shape_cast %4 : vector<1x1x16x128xf32> to vector<16x128xf32>
    %cst = arith.constant dense<0.000000e+00> : vector<128xf32>
    %6 = vector.multi_reduction <add>, %5, %cst [0] : vector<16x128xf32> to vector<128xf32>
    %7 = vector.shape_cast %6 : vector<128xf32> to vector<1x128xf32>
    %cst_10 = arith.constant 2.500000e-01 : f32
    %8 = vector.broadcast %cst_10 : f32 to vector<1x128xf32>
    %9 = arith.mulf %7, %8 : vector<1x128xf32>
    %10 = arith.mulf %5, %5 : vector<16x128xf32>
    %cst_11 = arith.constant dense<0.000000e+00> : vector<128xf32>
    %11 = vector.multi_reduction <add>, %10, %cst_11 [0] : vector<16x128xf32> to vector<128xf32>
    %12 = vector.shape_cast %11 : vector<128xf32> to vector<1x128xf32>
    %cst_12 = arith.constant 2.500000e-01 : f32
    %13 = vector.broadcast %cst_12 : f32 to vector<1x128xf32>
    %14 = arith.mulf %12, %13 : vector<1x128xf32>
    %15 = arith.mulf %9, %9 : vector<1x128xf32>
    %16 = arith.subf %14, %15 : vector<1x128xf32>
    %17 = vector.broadcast %9 : vector<1x128xf32> to vector<16x128xf32>
    %18 = arith.subf %5, %17 : vector<16x128xf32>
    %cst_13 = arith.constant 9.99999997E-7 : f32
    %19 = vector.broadcast %cst_13 : f32 to vector<1x128xf32>
    %20 = arith.addf %16, %19 : vector<1x128xf32>
    %21 = math.rsqrt %20 : vector<1x128xf32>
    %22 = vector.broadcast %21 : vector<1x128xf32> to vector<16x128xf32>
    %23 = arith.mulf %18, %22 : vector<16x128xf32>
    %24 = vector.broadcast %0 : vector<16x1xf32> to vector<16x128xf32>
    %25 = arith.mulf %23, %24 : vector<16x128xf32>
    %26 = vector.broadcast %1 : vector<16x1xf32> to vector<16x128xf32>
    %27 = arith.addf %25, %26 : vector<16x128xf32>
    %c0_14 = arith.constant 0 : index
    %c1_15 = arith.constant 1 : index
    %c0_16 = arith.constant 0 : index
    %c0_17 = arith.constant 0 : index
    %28 = vector.load %arg1[%c0_14, %c1_15, %c0_16, %c0_17] : memref<1x4x16x128xf32, #tpu.memory_space<vmem>>, vector<1x1x16x128xf32>
    %29 = vector.shape_cast %28 : vector<1x1x16x128xf32> to vector<16x128xf32>
    %cst_18 = arith.constant dense<0.000000e+00> : vector<128xf32>
    %30 = vector.multi_reduction <add>, %29, %cst_18 [0] : vector<16x128xf32> to vector<128xf32>
    %31 = vector.shape_cast %30 : vector<128xf32> to vector<1x128xf32>
    %cst_19 = arith.constant 2.500000e-01 : f32
    %32 = vector.broadcast %cst_19 : f32 to vector<1x128xf32>
    %33 = arith.mulf %31, %32 : vector<1x128xf32>
    %34 = arith.mulf %29, %29 : vector<16x128xf32>
    %cst_20 = arith.constant dense<0.000000e+00> : vector<128xf32>
    %35 = vector.multi_reduction <add>, %34, %cst_20 [0] : vector<16x128xf32> to vector<128xf32>
    %36 = vector.shape_cast %35 : vector<128xf32> to vector<1x128xf32>
    %cst_21 = arith.constant 2.500000e-01 : f32
    %37 = vector.broadcast %cst_21 : f32 to vector<1x128xf32>
    %38 = arith.mulf %36, %37 : vector<1x128xf32>
    %39 = arith.mulf %33, %33 : vector<1x128xf32>
    %40 = arith.subf %38, %39 : vector<1x128xf32>
    %41 = vector.broadcast %33 : vector<1x128xf32> to vector<16x128xf32>
    %42 = arith.subf %29, %41 : vector<16x128xf32>
    %cst_22 = arith.constant 9.99999997E-7 : f32
    %43 = vector.broadcast %cst_22 : f32 to vector<1x128xf32>
    %44 = arith.addf %40, %43 : vector<1x128xf32>
    %45 = math.rsqrt %44 : vector<1x128xf32>
    %46 = vector.broadcast %45 : vector<1x128xf32> to vector<16x128xf32>
    %47 = arith.mulf %42, %46 : vector<16x128xf32>
    %48 = vector.broadcast %0 : vector<16x1xf32> to vector<16x128xf32>
    %49 = arith.mulf %47, %48 : vector<16x128xf32>
    %50 = vector.broadcast %1 : vector<16x1xf32> to vector<16x128xf32>
    %51 = arith.addf %49, %50 : vector<16x128xf32>
    %c0_23 = arith.constant 0 : index
    %c2 = arith.constant 2 : index
    %c0_24 = arith.constant 0 : index
    %c0_25 = arith.constant 0 : index
    %52 = vector.load %arg1[%c0_23, %c2, %c0_24, %c0_25] : memref<1x4x16x128xf32, #tpu.memory_space<vmem>>, vector<1x1x16x128xf32>
    %53 = vector.shape_cast %52 : vector<1x1x16x128xf32> to vector<16x128xf32>
    %cst_26 = arith.constant dense<0.000000e+00> : vector<128xf32>
    %54 = vector.multi_reduction <add>, %53, %cst_26 [0] : vector<16x128xf32> to vector<128xf32>
    %55 = vector.shape_cast %54 : vector<128xf32> to vector<1x128xf32>
    %cst_27 = arith.constant 2.500000e-01 : f32
    %56 = vector.broadcast %cst_27 : f32 to vector<1x128xf32>
    %57 = arith.mulf %55, %56 : vector<1x128xf32>
    %58 = arith.mulf %53, %53 : vector<16x128xf32>
    %cst_28 = arith.constant dense<0.000000e+00> : vector<128xf32>
    %59 = vector.multi_reduction <add>, %58, %cst_28 [0] : vector<16x128xf32> to vector<128xf32>
    %60 = vector.shape_cast %59 : vector<128xf32> to vector<1x128xf32>
    %cst_29 = arith.constant 2.500000e-01 : f32
    %61 = vector.broadcast %cst_29 : f32 to vector<1x128xf32>
    %62 = arith.mulf %60, %61 : vector<1x128xf32>
    %63 = arith.mulf %57, %57 : vector<1x128xf32>
    %64 = arith.subf %62, %63 : vector<1x128xf32>
    %65 = vector.broadcast %57 : vector<1x128xf32> to vector<16x128xf32>
    %66 = arith.subf %53, %65 : vector<16x128xf32>
    %cst_30 = arith.constant 9.99999997E-7 : f32
    %67 = vector.broadcast %cst_30 : f32 to vector<1x128xf32>
    %68 = arith.addf %64, %67 : vector<1x128xf32>
    %69 = math.rsqrt %68 : vector<1x128xf32>
    %70 = vector.broadcast %69 : vector<1x128xf32> to vector<16x128xf32>
    %71 = arith.mulf %66, %70 : vector<16x128xf32>
    %72 = vector.broadcast %0 : vector<16x1xf32> to vector<16x128xf32>
    %73 = arith.mulf %71, %72 : vector<16x128xf32>
    %74 = vector.broadcast %1 : vector<16x1xf32> to vector<16x128xf32>
    %75 = arith.addf %73, %74 : vector<16x128xf32>
    %c0_31 = arith.constant 0 : index
    %c3 = arith.constant 3 : index
    %c0_32 = arith.constant 0 : index
    %c0_33 = arith.constant 0 : index
    %76 = vector.load %arg1[%c0_31, %c3, %c0_32, %c0_33] : memref<1x4x16x128xf32, #tpu.memory_space<vmem>>, vector<1x1x16x128xf32>
    %77 = vector.shape_cast %76 : vector<1x1x16x128xf32> to vector<16x128xf32>
    %cst_34 = arith.constant dense<0.000000e+00> : vector<128xf32>
    %78 = vector.multi_reduction <add>, %77, %cst_34 [0] : vector<16x128xf32> to vector<128xf32>
    %79 = vector.shape_cast %78 : vector<128xf32> to vector<1x128xf32>
    %cst_35 = arith.constant 2.500000e-01 : f32
    %80 = vector.broadcast %cst_35 : f32 to vector<1x128xf32>
    %81 = arith.mulf %79, %80 : vector<1x128xf32>
    %82 = arith.mulf %77, %77 : vector<16x128xf32>
    %cst_36 = arith.constant dense<0.000000e+00> : vector<128xf32>
    %83 = vector.multi_reduction <add>, %82, %cst_36 [0] : vector<16x128xf32> to vector<128xf32>
    %84 = vector.shape_cast %83 : vector<128xf32> to vector<1x128xf32>
    %cst_37 = arith.constant 2.500000e-01 : f32
    %85 = vector.broadcast %cst_37 : f32 to vector<1x128xf32>
    %86 = arith.mulf %84, %85 : vector<1x128xf32>
    %87 = arith.mulf %81, %81 : vector<1x128xf32>
    %88 = arith.subf %86, %87 : vector<1x128xf32>
    %89 = vector.broadcast %81 : vector<1x128xf32> to vector<16x128xf32>
    %90 = arith.subf %77, %89 : vector<16x128xf32>
    %cst_38 = arith.constant 9.99999997E-7 : f32
    %91 = vector.broadcast %cst_38 : f32 to vector<1x128xf32>
    %92 = arith.addf %88, %91 : vector<1x128xf32>
    %93 = math.rsqrt %92 : vector<1x128xf32>
    %94 = vector.broadcast %93 : vector<1x128xf32> to vector<16x128xf32>
    %95 = arith.mulf %90, %94 : vector<16x128xf32>
    %96 = vector.broadcast %0 : vector<16x1xf32> to vector<16x128xf32>
    %97 = arith.mulf %95, %96 : vector<16x128xf32>
    %98 = vector.broadcast %1 : vector<16x1xf32> to vector<16x128xf32>
    %99 = arith.addf %97, %98 : vector<16x128xf32>
    %c1_i32 = arith.constant 1 : i32
    %100 = tpu.dynamic_rotate %51 by %c1_i32 dim 1 : vector<16x128xf32>, i32 -> vector<16x128xf32>
    %101 = vector.broadcast %2 : vector<1x128xf32> to vector<16x128xf32>
    %102 = arith.mulf %100, %101 : vector<16x128xf32>
    %c1_i32_39 = arith.constant 1 : i32
    %103 = tpu.dynamic_rotate %99 by %c1_i32_39 dim 1 : vector<16x128xf32>, i32 -> vector<16x128xf32>
    %104 = vector.broadcast %2 : vector<1x128xf32> to vector<16x128xf32>
    %105 = arith.mulf %103, %104 : vector<16x128xf32>
    %c8_i32 = arith.constant 8 : i32
    %106 = tpu.dynamic_rotate %105 by %c8_i32 dim 1 : vector<16x128xf32>, i32 -> vector<16x128xf32>
    %107 = vector.broadcast %3 : vector<1x128xf32> to vector<16x128xf32>
    %108 = arith.mulf %106, %107 : vector<16x128xf32>
    %109 = arith.truncf %108 : vector<16x128xf32> to vector<16x128xbf16>
    %c0_40 = arith.constant 0 : index
    %c0_41 = arith.constant 0 : index
    %110 = vector.load %arg7[%c0_40, %c0_41] : memref<144x128xbf16, #tpu.memory_space<vmem>>, vector<16x128xbf16>
    tpu.vector_store %arg7[%c0_40, %c0_41], %109 {strides = array<i32>} : memref<144x128xbf16, #tpu.memory_space<vmem>>, vector<16x128xbf16>,
    %c8_i32_42 = arith.constant 8 : i32
    %111 = tpu.dynamic_rotate %75 by %c8_i32_42 dim 1 : vector<16x128xf32>, i32 -> vector<16x128xf32>
    %112 = vector.broadcast %3 : vector<1x128xf32> to vector<16x128xf32>
    %113 = arith.mulf %111, %112 : vector<16x128xf32>
    %114 = arith.truncf %113 : vector<16x128xf32> to vector<16x128xbf16>
    %c16 = arith.constant 16 : index
    %c0_43 = arith.constant 0 : index
    %115 = vector.load %arg7[%c16, %c0_43] : memref<144x128xbf16, #tpu.memory_space<vmem>>, vector<16x128xbf16>
    tpu.vector_store %arg7[%c16, %c0_43], %114 {strides = array<i32>} : memref<144x128xbf16, #tpu.memory_space<vmem>>, vector<16x128xbf16>,
    %c8_i32_44 = arith.constant 8 : i32
    %116 = tpu.dynamic_rotate %99 by %c8_i32_44 dim 1 : vector<16x128xf32>, i32 -> vector<16x128xf32>
    %117 = vector.broadcast %3 : vector<1x128xf32> to vector<16x128xf32>
    %118 = arith.mulf %116, %117 : vector<16x128xf32>
    %119 = arith.truncf %118 : vector<16x128xf32> to vector<16x128xbf16>
    %c32 = arith.constant 32 : index
    %c0_45 = arith.constant 0 : index
    %120 = vector.load %arg7[%c32, %c0_45] : memref<144x128xbf16, #tpu.memory_space<vmem>>, vector<16x128xbf16>
    tpu.vector_store %arg7[%c32, %c0_45], %119 {strides = array<i32>} : memref<144x128xbf16, #tpu.memory_space<vmem>>, vector<16x128xbf16>,
    %121 = arith.truncf %102 : vector<16x128xf32> to vector<16x128xbf16>
    %c48 = arith.constant 48 : index
    %c0_46 = arith.constant 0 : index
    %122 = vector.load %arg7[%c48, %c0_46] : memref<144x128xbf16, #tpu.memory_space<vmem>>, vector<16x128xbf16>
    tpu.vector_store %arg7[%c48, %c0_46], %121 {strides = array<i32>} : memref<144x128xbf16, #tpu.memory_space<vmem>>, vector<16x128xbf16>,
    %123 = arith.truncf %27 : vector<16x128xf32> to vector<16x128xbf16>
    %c64 = arith.constant 64 : index
    %c0_47 = arith.constant 0 : index
    %124 = vector.load %arg7[%c64, %c0_47] : memref<144x128xbf16, #tpu.memory_space<vmem>>, vector<16x128xbf16>
    tpu.vector_store %arg7[%c64, %c0_47], %123 {strides = array<i32>} : memref<144x128xbf16, #tpu.memory_space<vmem>>, vector<16x128xbf16>,
    %125 = arith.truncf %51 : vector<16x128xf32> to vector<16x128xbf16>
    %c80 = arith.constant 80 : index
    %c0_48 = arith.constant 0 : index
    %126 = vector.load %arg7[%c80, %c0_48] : memref<144x128xbf16, #tpu.memory_space<vmem>>, vector<16x128xbf16>
    tpu.vector_store %arg7[%c80, %c0_48], %125 {strides = array<i32>} : memref<144x128xbf16, #tpu.memory_space<vmem>>, vector<16x128xbf16>,
    %127 = arith.truncf %105 : vector<16x128xf32> to vector<16x128xbf16>
    %c96 = arith.constant 96 : index
    %c0_49 = arith.constant 0 : index
    %128 = vector.load %arg7[%c96, %c0_49] : memref<144x128xbf16, #tpu.memory_space<vmem>>, vector<16x128xbf16>
    tpu.vector_store %arg7[%c96, %c0_49], %127 {strides = array<i32>} : memref<144x128xbf16, #tpu.memory_space<vmem>>, vector<16x128xbf16>,
    %129 = arith.truncf %75 : vector<16x128xf32> to vector<16x128xbf16>
    %c112 = arith.constant 112 : index
    %c0_50 = arith.constant 0 : index
    %130 = vector.load %arg7[%c112, %c0_50] : memref<144x128xbf16, #tpu.memory_space<vmem>>, vector<16x128xbf16>
    tpu.vector_store %arg7[%c112, %c0_50], %129 {strides = array<i32>} : memref<144x128xbf16, #tpu.memory_space<vmem>>, vector<16x128xbf16>,
    %131 = arith.truncf %99 : vector<16x128xf32> to vector<16x128xbf16>
    %c128 = arith.constant 128 : index
    %c0_51 = arith.constant 0 : index
    %132 = vector.load %arg7[%c128, %c0_51] : memref<144x128xbf16, #tpu.memory_space<vmem>>, vector<16x128xbf16>
    tpu.vector_store %arg7[%c128, %c0_51], %131 {strides = array<i32>} : memref<144x128xbf16, #tpu.memory_space<vmem>>, vector<16x128xbf16>,
    %c0_52 = arith.constant 0 : index
    %c0_53 = arith.constant 0 : index
    %133 = vector.load %arg3[%c0_52, %c0_53] : memref<8x144xbf16, #tpu.memory_space<vmem>>, vector<8x144xbf16>
    %c0_54 = arith.constant 0 : index
    %c0_55 = arith.constant 0 : index
    %134 = vector.load %arg7[%c0_54, %c0_55] : memref<144x128xbf16, #tpu.memory_space<vmem>>, vector<144x128xbf16>
    %cst_56 = arith.constant dense<0.000000e+00> : vector<8x128xf32>
    %135 = tpu.matmul %133, %134, %cst_56 {dimension_numbers = #tpu.dot_dimension_numbers<[1], [0], [0], [1], [0, 0, 1, 1], [], []>} : vector<8x144xbf16>, vector<144x128xbf16>, vector<8x128xf32> -> vector<8x128xf32>
    %c0_57 = arith.constant 0 : index
    %c0_58 = arith.constant 0 : index
    %136 = vector.load %arg4[%c0_57, %c0_58] : memref<8x1xf32, #tpu.memory_space<vmem>>, vector<8x1xf32>
    %137 = vector.broadcast %136 : vector<8x1xf32> to vector<8x128xf32>
    %138 = arith.addf %135, %137 : vector<8x128xf32>
    %c0_59 = arith.constant 0 : index
    %c0_60 = arith.constant 0 : index
    %c0_61 = arith.constant 0 : index
    %139 = vector.load %arg6[%c0_59, %c0_60, %c0_61] : memref<1x8x128xf32, #tpu.memory_space<vmem>>, vector<1x8x128xf32>
    %140 = vector.shape_cast %139 : vector<1x8x128xf32> to vector<8x128xf32>
    %141 = vector.shape_cast %138 : vector<8x128xf32> to vector<1x8x128xf32>
    tpu.vector_store %arg6[%c0_59, %c0_60, %c0_61], %141 {strides = array<i32>} : memref<1x8x128xf32, #tpu.memory_space<vmem>>, vector<1x8x128xf32>,
    return
  }
  func.func @transform_0(%arg0: i32) -> (i32, i32, i32, i32) {
    %c0_i32 = arith.constant 0 : i32
    %c0_i32_0 = arith.constant 0 : i32
    %c0_i32_1 = arith.constant 0 : i32
    %c0_i32_2 = arith.constant 0 : i32
    return %arg0, %c0_i32, %c0_i32_0, %c0_i32_1 : i32, i32, i32, i32
  }
  func.func @transform_1(%arg0: i32) -> (i32, i32) {
    %c0_i32 = arith.constant 0 : i32
    %c0_i32_0 = arith.constant 0 : i32
    %c0_i32_1 = arith.constant 0 : i32
    return %c0_i32, %c0_i32_0 : i32, i32
  }
  func.func @transform_2(%arg0: i32) -> (i32, i32) {
    %c0_i32 = arith.constant 0 : i32
    %c0_i32_0 = arith.constant 0 : i32
    %c0_i32_1 = arith.constant 0 : i32
    return %c0_i32, %c0_i32_0 : i32, i32
  }
  func.func @transform_3(%arg0: i32) -> (i32, i32) {
    %c0_i32 = arith.constant 0 : i32
    %c0_i32_0 = arith.constant 0 : i32
    %c0_i32_1 = arith.constant 0 : i32
    return %c0_i32, %c0_i32_0 : i32, i32
  }
  func.func @transform_4(%arg0: i32) -> (i32, i32) {
    %c0_i32 = arith.constant 0 : i32
    %c0_i32_0 = arith.constant 0 : i32
    %c0_i32_1 = arith.constant 0 : i32
    return %c0_i32, %c0_i32_0 : i32, i32
  }
  func.func @transform_5(%arg0: i32) -> (i32, i32, i32) {
    %c0_i32 = arith.constant 0 : i32
    %c0_i32_0 = arith.constant 0 : i32
    %c0_i32_1 = arith.constant 0 : i32
    return %arg0, %c0_i32, %c0_i32_0 : i32, i32, i32
  }
}

</mosaic_0001>

<bundles_post_ra>
// kernel: tpu_custom_call.1
= control target key start
LH: loop header
LB: loop body
LE: loop exit
PB: predicated region body
PF: predicated region fallthrough
CT: control target
= control target key end

     0   :  { %10 = vsyncpa [#allocation4], 0  ;;  %s763_s0 = inlined_call_operand.hbm [shape: f32[1,4,16,128], index: 0, kind: input, shape index: {}]   ;;  %s764_s1 = inlined_call_operand.vmem [shape: f32[16,2], index: 1, kind: input, shape index: {}]   ;;  %s765_s2 = inlined_call_operand.vmem [shape: bf16[8,144], index: 2, kind: input, shape index: {}]   ;;  %s766_s3 = inlined_call_operand.vmem [shape: f32[8,1], index: 3, kind: input, shape index: {}]   ;;  %s767_s4 = inlined_call_operand.vmem [shape: f32[2,128], index: 4, kind: input, shape index: {}]   ;;  %s768_s5 = inlined_call_operand.hbm [shape: f32[1,8,128], index: 5, kind: output, shape index: {}]  }
   0x1   :  { %11 = vsyncpa [#allocation5], 0  ;;  %s637_s18 = smov [#allocation3]  }
   0x2   :  { %s17_s19 = sshll.u32 %s637_s18, 4  ;;  %s18_s19 = int_to_ptr.vmem [resolvable:$true] %s17_s19 }
   0x3   :  { %s601_s20 = scalar_lea.vmem %s18_s19, 1024  ;;  %p606_p1 = scmp.lt.s32.totalorder %s18_s19, %s18_s19 }
   0x4   :  { %p602_p0 = scmp.ne.s32.totalorder %s18_s19, %s601_s20  ;;  %p607_p2 = scmp.lt.s32.totalorder %s601_s20, %s601_s20 }
   0x6   :  { %p608_p3 = por %p607_p2, %p606_p1 }
   0x8   :  { %p609_p4 = pnand %p608_p3, %p602_p0 }
   0xa   :  { %612 = shalt.err (!%p609_p4)
}
   0xb   :  { %s638_s21 = smov 128   ;;  %s639_s22 = smov 8  }
   0xc   :  { %23 = dma.hbm_to_vmem [thread:$0]  %s763_s0, 1024, %s18_s19, [#allocation4], %s638_s21, %s638_s21, %s639_s22  }
   0xd   :  { %633 = dma.done.wait [#allocation4], 1024  }
   0xe   :  { %634 = vsyncadd [#allocation4], 4294966272  ;;  %v640_v0 = vmov 1   ;;  %v641_v1 = vmov 0   ;;  %v36_v2 = vld [vmem:[%s764_s1] sm:$0xff]  ;;  %v37_v3 = vld [vmem:[%s764_s1 + $0x8] sm:$0xff] }
   0xf   :  { %573 = vset.pattern.permute.xlu1 %v640_v0  ;;  %572 = vset.pattern.permute.xlu0 %v641_v1  ;;  %v686_v4 = vld [vmem:[#allocation3] sm:$0xff]  ;;  %v688_v5 = vld [vmem:[#allocation3 + $0x8] sm:$0xff]  ;;  %v690_v6 = vld [vmem:[#allocation3 + $0x30] sm:$0xff]  ;;  %s642_s0 = smov 1   ;;  %vm402_vm0 = vcmask 130048  }
  0x10   :  { %406 = vmatprep.subr.bf16.mxu0 %v641_v1  ;;  %81 = vperm.xlu1 %573, %v36_v2   ;;  %v692_v7 = vld [vmem:[#allocation3 + $0x38] sm:$0xff]  ;;  %v42_v8 = vadd.f32 %v688_v5, %v686_v4  ;;  %v696_v9 = vld [vmem:[#allocation3 + $0x10] sm:$0xff]  ;;  %v50_v11 = vmul.f32 %v686_v4, %v686_v4  ;;  %v51_v12 = vmul.f32 %v688_v5, %v688_v5  ;;  %v710_v16 = vld [vmem:[#allocation3 + $0x20] sm:$0xff] }
  0x11   :  { %70 = vperm.xlu0 %572, %v36_v2   ;;  %v698_v10 = vld [vmem:[#allocation3 + $0x18] sm:$0xff]  ;;  %v159_v13 = vadd.f32 %v692_v7, %v690_v6  ;;  %v167_v14 = vmul.f32 %v690_v6, %v690_v6  ;;  %v168_v15 = vmul.f32 %v692_v7, %v692_v7  ;;  %v712_v17 = vld [vmem:[#allocation3 + $0x28] sm:$0xff]  ;;  %v101_v19 = vmul.f32 %v696_v9, %v696_v9 }
  0x12   :  { %v93_v18 = vadd.f32 %v698_v10, %v696_v9  ;;  %v102_v20 = vmul.f32 %v698_v10, %v698_v10  ;;  %v43_v21 = vrot.slane %v42_v8, 4  ;;  %v52_v22 = vadd.f32 %v51_v12, %v50_v11 }
  0x13   :  { %v126_v23 = vadd.f32 %v712_v17, %v710_v16  ;;  %v134_v24 = vmul.f32 %v710_v16, %v710_v16  ;;  %v135_v25 = vmul.f32 %v712_v17, %v712_v17  ;;  %v160_v26 = vrot.slane %v159_v13, 4 }
  0x14   :  { %85 = vperm.xlu1 %573, %v37_v3   ;;  %v169_v27 = vadd.f32 %v168_v15, %v167_v14  ;;  %v94_v28 = vrot.slane %v93_v18, 4  ;;  %v103_v29 = vadd.f32 %v102_v20, %v101_v19  ;;  %v44_v30 = vadd.f32 %v43_v21, %v42_v8 }
  0x15   :  { %75 = vperm.xlu0 %572, %v37_v3   ;;  %v53_v31 = vrot.slane %v52_v22, 4  ;;  %v127_v32 = vrot.slane %v126_v23, 4  ;;  %v136_v33 = vadd.f32 %v135_v25, %v134_v24  ;;  %v161_v34 = vadd.f32 %v160_v26, %v159_v13 }
  0x16   :  { %v170_v35 = vrot.slane %v169_v27, 4  ;;  %v95_v36 = vadd.f32 %v94_v28, %v93_v18  ;;  %v104_v37 = vrot.slane %v103_v29, 4  ;;  %v45_v38 = vrot.slane %v44_v30, 2 }
  0x17   :  { %v54_v39 = vadd.f32 %v53_v31, %v52_v22  ;;  %v128_v40 = vadd.f32 %v127_v32, %v126_v23  ;;  %v137_v41 = vrot.slane %v136_v33, 4  ;;  %v162_v42 = vrot.slane %v161_v34, 2 }
  0x18   :  { %v171_v43 = vadd.f32 %v170_v35, %v169_v27  ;;  %v96_v44 = vrot.slane %v95_v36, 2  ;;  %v105_v45 = vadd.f32 %v104_v37, %v103_v29  ;;  %v46_v46 = vadd.f32 %v45_v38, %v44_v30 }
  0x19   :  { %v55_v47 = vrot.slane %v54_v39, 2  ;;  %v129_v48 = vrot.slane %v128_v40, 2  ;;  %v138_v49 = vadd.f32 %v137_v41, %v136_v33  ;;  %v163_v50 = vadd.f32 %v162_v42, %v161_v34 }
  0x1a   :  { %v172_v51 = vrot.slane %v171_v43, 2  ;;  %v97_v52 = vadd.f32 %v96_v44, %v95_v36  ;;  %v106_v53 = vrot.slane %v105_v45, 2  ;;  %v47_v54 = vrot.slane %v46_v46, 1 }
  0x1b   :  { %v56_v55 = vadd.f32 %v55_v47, %v54_v39  ;;  %v130_v56 = vadd.f32 %v129_v48, %v128_v40  ;;  %v139_v57 = vrot.slane %v138_v49, 2  ;;  %v164_v58 = vrot.slane %v163_v50, 1 }
  0x1c   :  { %v173_v59 = vadd.f32 %v172_v51, %v171_v43  ;;  %v98_v60 = vrot.slane %v97_v52, 1  ;;  %v107_v61 = vadd.f32 %v106_v53, %v105_v45  ;;  %v48_v62 = vadd.f32 %v47_v54, %v46_v46 }
  0x1d   :  { %v57_v63 = vrot.slane %v56_v55, 1  ;;  %v131_v0 = vrot.slane %v130_v56, 1  ;;  %v140_v2 = vadd.f32 %v139_v57, %v138_v49  ;;  %v165_v3 = vadd.f32 %v164_v58, %v163_v50 }
  0x1e   :  { %v174_v8 = vrot.slane %v173_v59, 1  ;;  %v99_v11 = vadd.f32 %v98_v60, %v97_v52  ;;  %v108_v12 = vrot.slane %v107_v61, 1  ;;  %v49_v13 = vmul.f32 0.25, %v48_v62 }
  0x1f   :  { %v58_v14 = vadd.f32 %v57_v63, %v56_v55  ;;  %v132_v15 = vadd.f32 %v131_v0, %v130_v56  ;;  %v141_v18 = vrot.slane %v140_v2, 1  ;;  %v166_v19 = vmul.f32 0.25, %v165_v3 }
  0x20   :  { %v175_v20 = vadd.f32 %v174_v8, %v173_v59  ;;  %v100_v21 = vmul.f32 0.25, %v99_v11  ;;  %v109_v22 = vadd.f32 %v108_v12, %v107_v61  ;;  %v60_v24 = vmul.f32 %v49_v13, %v49_v13 }
  0x21   :  { %v59_v23 = vmul.f32 0.25, %v58_v14  ;;  %v133_v25 = vmul.f32 0.25, %v132_v15  ;;  %v142_v26 = vadd.f32 %v141_v18, %v140_v2  ;;  %v177_v28 = vmul.f32 %v166_v19, %v166_v19 }
  0x22   :  { %v176_v27 = vmul.f32 0.25, %v175_v20  ;;  %v110_v29 = vmul.f32 0.25, %v109_v22  ;;  %v111_v30 = vmul.f32 %v100_v21, %v100_v21  ;;  %v179_v42 = vsub.f32 %v690_v6, %v166_v19 }
  0x23   :  { %v61_v31 = vsub.f32 %v59_v23, %v60_v24  ;;  %v143_v32 = vmul.f32 0.25, %v142_v26  ;;  %v144_v33 = vmul.f32 %v133_v25, %v133_v25  ;;  %v62_v44 = vsub.f32 %v686_v4, %v49_v13  ;;  %v462_v23 = vld [vmem:[%s767_s4] ss:$0 sm:$0xff] }
  0x24   :  { %v178_v34 = vsub.f32 %v176_v27, %v177_v28  ;;  %v112_v35 = vsub.f32 %v110_v29, %v111_v30  ;;  %v113_v45 = vsub.f32 %v696_v9, %v100_v21  ;;  %v63_v47 = vsub.f32 %v688_v5, %v49_v13  ;;  %v336_v28 = vld [vmem:[%s766_s3] sm:$0xff] }
  0x25   :  { %v64_v36 = vadd.f32 1e-06, %v61_v31  ;;  %v145_v37 = vsub.f32 %v143_v32, %v144_v33  ;;  %v146_v48 = vsub.f32 %v710_v16, %v133_v25  ;;  %v114_v51 = vsub.f32 %v698_v10, %v100_v21 }
  0x26   :  { %v181_v38 = vadd.f32 1e-06, %v178_v34  ;;  %v115_v39 = vadd.f32 1e-06, %v112_v35  ;;  %v147_v52 = vsub.f32 %v712_v17, %v133_v25  ;;  %v180_v53 = vsub.f32 %v692_v7, %v166_v19  ;;  %v463_v35 = vld [vmem:[%s767_s4 + $0x1] ss:$0 sm:$0xff] }
  0x27   :  { %585 = vrsqrt.f32 %v64_v36  ;;  %v148_v40 = vadd.f32 1e-06, %v145_v37  ;;  %v317_v37 = vld [vmem:[%s765_s2] sm:$0xff]  ;;  %s643_s2 = smov [#allocation6]  }
  0x28   :  { %587 = vrsqrt.f32 %v181_v38  ;;  %s453_s3 = sshll.u32 %s643_s2, 4  ;;  %s454_s3 = int_to_ptr.vmem [resolvable:$true] %s453_s3 }
  0x29   :  { %589 = vrsqrt.f32 %v115_v39  ;;  %v483_v39 = vcombine.high %v317_v37, %v317_v37  ;;  %s613_s4 = scalar_lea.vmem %s454_s3, 128  ;;  %p618_p6 = scmp.lt.s32.totalorder %s454_s3, %s454_s3 }
  0x2a   :  { %591 = vrsqrt.f32 %v148_v40  ;;  %p614_p5 = scmp.ne.s32.totalorder %s454_s3, %s613_s4  ;;  %p619_p7 = scmp.lt.s32.totalorder %s613_s4, %s613_s4 }
  0x2b   :  { %493 = vmatprep.mubr.msk.bf16.mxu0 %vm402_vm0, %v483_v39 }
  0x2c   :  { %p620_p8 = por %p619_p7, %p618_p6 }
  0x2e   :  { %p621_p9 = pnand %p620_p8, %p614_p5 }
  0x34   :  { %v586_v41 = vpop.eup %585 }
  0x35   :  { %v588_v43 = vpop.eup %587  ;;  %v66_v54 = vmul.f32 %v586_v41, %v62_v44  ;;  %v67_v4 = vmul.f32 %v586_v41, %v63_v47 }
  0x36   :  { %v590_v46 = vpop.eup %589  ;;  %v183_v50 = vmul.f32 %v588_v43, %v179_v42  ;;  %v184_v5 = vmul.f32 %v588_v43, %v180_v53 }
  0x37   :  { %v592_v49 = vpop.eup %591  ;;  %v117_v6 = vmul.f32 %v590_v46, %v113_v45  ;;  %v118_v58 = vmul.f32 %v590_v46, %v114_v51 }
  0x38   :  { %v150_v57 = vmul.f32 %v592_v49, %v146_v48  ;;  %v151_v59 = vmul.f32 %v592_v49, %v147_v52 }
  0x8b   :  { %v82_v55 = vpop.permute.xlu1 %81 }
  0x8c   :  { %v71_v56 = vpop.permute.xlu0 %70 }
  0x8d   :  { %v185_v9 = vmul.f32 %v183_v50, %v71_v56  ;;  %v78_v60 = vmul.f32 %v71_v56, %v66_v54  ;;  %v119_v16 = vmul.f32 %v117_v6, %v71_v56  ;;  %v152_v63 = vmul.f32 %v150_v57, %v71_v56 }
  0x8f   :  { %v187_v61 = vadd.f32 %v185_v9, %v82_v55  ;;  %v88_v7 = vadd.f32 %v82_v55, %v78_v60  ;;  %v86_v3 = vpop.permute.xlu1 %85  ;;  %v121_v8 = vadd.f32 %v119_v16, %v82_v55  ;;  %v154_v15 = vadd.f32 %v152_v63, %v82_v55 }
  0x90   :  { %v76_v62 = vpop.permute.xlu0 %75 }
  0x91   :  { %v79_v10 = vmul.f32 %v76_v62, %v67_v4  ;;  %v120_v0 = vmul.f32 %v118_v58, %v76_v62  ;;  %v153_v17 = vmul.f32 %v151_v59, %v76_v62  ;;  %v186_v2 = vmul.f32 %v184_v5, %v76_v62  ;;  %199 = vrot.lane.b32.xlu0 %v187_v61, %s642_s0 }
  0x92   :  { %v482_v58 = vcombine.low %v317_v37, %v317_v37 }
  0x93   :  { %v89_v11 = vadd.f32 %v86_v3, %v79_v10  ;;  %v188_v12 = vadd.f32 %v186_v2, %v86_v3  ;;  %v122_v13 = vadd.f32 %v120_v0, %v86_v3  ;;  %v155_v14 = vadd.f32 %v153_v17, %v86_v3 }
  0x95   :  { %v535_v18 = vpack.c.bf16 %v89_v11, %v88_v7  ;;  %189 = vrot.lane.b32.xlu0 %v121_v8, %s642_s0  ;;  %201 = vrot.lane.b32.xlu1 %v188_v12, %s642_s0  ;;  %v555_v19 = vpack.c.bf16 %v188_v12, %v187_v61  ;;  %v540_v20 = vpack.c.bf16 %v122_v13, %v121_v8 }
  0x96   :  { %v550_v21 = vpack.c.bf16 %v155_v14, %v154_v15 }
  0x97   :  { %560 = vst [vmem:[#allocation2 + $0x20] sm:$0xff] %v535_v18   ;;  %564 = vst [vmem:[#allocation2 + $0x40] sm:$0xff] %v555_v19  }
  0x98   :  { %561 = vst [vmem:[#allocation2 + $0x28] sm:$0xff] %v540_v20   ;;  %563 = vst [vmem:[#allocation2 + $0x38] sm:$0xff] %v550_v21  }
  0x99   :  { %241 = vrot.lane.b32.xlu0 %v187_v61, %s639_s22  ;;  %191 = vrot.lane.b32.xlu1 %v122_v13, %s642_s0 }
  0x9d   :  { %225 = vrot.lane.b32.xlu0 %v154_v15, %s639_s22  ;;  %243 = vrot.lane.b32.xlu1 %v188_v12, %s639_s22 }
  0x9e   :  { %v577_v50 = vld [vmem:[#allocation2 + $0x20] sm:$0xff]  }
  0x9f   :  { %v574_v22 = vld [vmem:[#allocation2 + $0x38] sm:$0xff]   ;;  %v576_v49 = vld [vmem:[#allocation2 + $0x28] sm:$0xff]   ;;  %v582_v9 = vld [vmem:[#allocation2 + $0x40] sm:$0xff]  }
  0xa0   :  { %407 = vmatpush1.bf16.msra.mxu0 %v574_v22 }
  0xa1   :  { %227 = vrot.lane.b32.xlu1 %v155_v14, %s639_s22  ;;  %408 = vmatprep.subr.bf16.mxu0 %v641_v1 }
 0x103   :  { %v200_v24 = vpop.permute.xlu0 %199 }
 0x104   :  { %v203_v25 = vmul.f32 %v462_v23, %v200_v24 }
 0x106   :  { %205 = vrot.lane.b32.xlu0 %v203_v25, %s639_s22 }
 0x107   :  { %v202_v26 = vpop.permute.xlu1 %201  ;;  %v190_v27 = vpop.permute.xlu0 %189 }
 0x108   :  { %v204_v29 = vmul.f32 %v462_v23, %v202_v26  ;;  %v197_v33 = vmul.f32 %v462_v23, %v190_v27 }
 0x10a   :  { %v545_v30 = vpack.c.bf16 %v204_v29, %v203_v25  ;;  %207 = vrot.lane.b32.xlu1 %v204_v29, %s639_s22  ;;  %339 = vperm.xlu0 %572, %v336_v28  }
 0x10b   :  { %v192_v31 = vpop.permute.xlu1 %191  ;;  %v242_v32 = vpop.permute.xlu0 %241 }
 0x10c   :  { %562 = vst [vmem:[#allocation2 + $0x30] sm:$0xff] %v545_v30   ;;  %v198_v34 = vmul.f32 %v462_v23, %v192_v31  ;;  %v245_v40 = vmul.f32 %v463_v35, %v242_v32 }
 0x10e   :  { %v530_v36 = vpack.c.bf16 %v198_v34, %v197_v33 }
 0x10f   :  { %v244_v38 = vpop.permute.xlu1 %243  ;;  %v226_v42 = vpop.permute.xlu0 %225 }
 0x110   :  { %559 = vst [vmem:[#allocation2 + $0x18] sm:$0xff] %v530_v36   ;;  %v246_v41 = vmul.f32 %v463_v35, %v244_v38  ;;  %v229_v46 = vmul.f32 %v463_v35, %v226_v42 }
 0x112   :  { %v525_v43 = vpack.c.bf16 %v246_v41, %v245_v40 }
 0x113   :  { %v228_v44 = vpop.permute.xlu1 %227  ;;  %v575_v45 = vld [vmem:[#allocation2 + $0x30] sm:$0xff]  }
 0x114   :  { %558 = vst [vmem:[#allocation2 + $0x10] sm:$0xff] %v525_v43   ;;  %v230_v47 = vmul.f32 %v463_v35, %v228_v44  ;;  %409 = vmatpush1.bf16.msra.mxu0 %v575_v45 }
 0x115   :  { %410 = vmatprep.subr.bf16.mxu0 %v641_v1 }
 0x116   :  { %v520_v48 = vpack.c.bf16 %v230_v47, %v229_v46 }
 0x117   :  { %v578_v51 = vld [vmem:[#allocation2 + $0x18] sm:$0xff]  }
 0x118   :  { %557 = vst [vmem:[#allocation2 + $0x8] sm:$0xff] %v520_v48   ;;  %411 = vmatpush1.bf16.msra.mxu0 %v576_v49 }
 0x119   :  { %412 = vmatprep.subr.bf16.mxu0 %v641_v1 }
 0x11b   :  { %v579_v52 = vld [vmem:[#allocation2 + $0x10] sm:$0xff]  }
 0x11c   :  { %413 = vmatpush1.bf16.msra.mxu0 %v577_v50 }
 0x11d   :  { %414 = vmatprep.subr.bf16.mxu0 %v641_v1 }
 0x11f   :  { %v580_v53 = vld [vmem:[#allocation2 + $0x8] sm:$0xff]  }
 0x120   :  { %415 = vmatpush1.bf16.msra.mxu0 %v578_v51 }
 0x121   :  { %416 = vmatprep.subr.bf16.mxu0 %v641_v1 }
 0x124   :  { %417 = vmatpush1.bf16.msra.mxu0 %v579_v52 }
 0x125   :  { %418 = vmatprep.subr.bf16.mxu0 %v641_v1 }
 0x128   :  { %419 = vmatpush1.bf16.msra.mxu0 %v580_v53 }
 0x129   :  { %420 = vmatprep.subr.bf16.mxu0 %v641_v1 }
 0x178   :  { %v206_v54 = vpop.permute.xlu0 %205 }
 0x179   :  { %v213_v55 = vmul.f32 %v463_v35, %v206_v54 }
 0x17c   :  { %v208_v6 = vpop.permute.xlu1 %207 }
 0x17d   :  { %v214_v56 = vmul.f32 %v463_v35, %v208_v6 }
 0x17f   :  { %v515_v4 = vpack.c.bf16 %v214_v56, %v213_v55 }
 0x181   :  { %516 = vst [vmem:[#allocation2] sm:$0xff] %v515_v4  }
 0x185   :  { %v340_v59 = vpop.permute.xlu0 %339 }
 0x188   :  { %v581_v57 = vld [vmem:[#allocation2] sm:$0xff]  }
 0x189   :  { %421 = vmatpush1.bf16.msra.mxu0 %v581_v57 }
 0x18a   :  { %436 = vmatprep.subr.bf16.mxu0 %v641_v1 }
 0x18d   :  { %437 = vmatpush2.bf16.msra.mxu0 %v582_v9 }
 0x190   :  { %439 = vmatmul.mubr.bf16.vlgmr.msra.gmra.mxu0 %v482_v58 }
 0x250   :  { %v440_v5 = vpop.f32.mrf.mxu0 }
 0x251   :  { %v441_v60 = vadd.f32 %v440_v5, %v340_v59 }
 0x252   :  { %v442_v16 = vpop.f32.mrf.mxu0 }
 0x253   :  { %446 = vst [vmem:[#allocation6] sm:$0xff] %v441_v60 }
 0x254   :  { %v443_v61 = vpop.f32.mrf.mxu0 }
 0x255   :  { %624 = shalt.err (!%p621_p9)
}
 0x256   :  { %456 = dma.vmem_to_hbm [thread:$0]  %s454_s3, 128, %s768_s5, [#allocation5]   ;;  %v444_v1 = vpop.f32.mrf.mxu0 }
 0x257   :  { %635 = dma.done.wait [#allocation5], 128  }
 0x258   :  { %636 = vsyncadd [#allocation5], 4294967168 }
 0x259   :  { %460 = vsyncpa [#allocation4], 1 }
 0x25a   :  { %461 = vsyncpa [#allocation5], 1 }

// kernel: tpu_custom_call.1
= control target key start
LH: loop header
LB: loop body
LE: loop exit
PB: predicated region body
PF: predicated region fallthrough
CT: control target
= control target key end

     0   :  { %10 = vsyncpa [#allocation4], 0  ;;  %s763_s0 = inlined_call_operand.hbm [shape: f32[1,4,16,128], index: 0, kind: input, shape index: {}]   ;;  %s764_s1 = inlined_call_operand.vmem [shape: f32[16,2], index: 1, kind: input, shape index: {}]   ;;  %s765_s2 = inlined_call_operand.vmem [shape: bf16[8,144], index: 2, kind: input, shape index: {}]   ;;  %s766_s3 = inlined_call_operand.vmem [shape: f32[8,1], index: 3, kind: input, shape index: {}]   ;;  %s767_s4 = inlined_call_operand.vmem [shape: f32[2,128], index: 4, kind: input, shape index: {}]   ;;  %s768_s5 = inlined_call_operand.hbm [shape: f32[1,8,128], index: 5, kind: output, shape index: {}]  }
   0x1   :  { %11 = vsyncpa [#allocation5], 0  ;;  %s637_s18 = smov [#allocation3]  }
   0x2   :  { %s17_s19 = sshll.u32 %s637_s18, 4  ;;  %s18_s19 = int_to_ptr.vmem [resolvable:$true] %s17_s19 }
   0x3   :  { %s601_s20 = scalar_lea.vmem %s18_s19, 1024  ;;  %p606_p1 = scmp.lt.s32.totalorder %s18_s19, %s18_s19 }
   0x4   :  { %p602_p0 = scmp.ne.s32.totalorder %s18_s19, %s601_s20  ;;  %p607_p2 = scmp.lt.s32.totalorder %s601_s20, %s601_s20 }
   0x6   :  { %p608_p3 = por %p607_p2, %p606_p1 }
   0x8   :  { %p609_p4 = pnand %p608_p3, %p602_p0 }
   0xa   :  { %612 = shalt.err (!%p609_p4)
}
   0xb   :  { %s638_s21 = smov 128   ;;  %s639_s22 = smov 8  }
   0xc   :  { %23 = dma.hbm_to_vmem [thread:$0]  %s763_s0, 1024, %s18_s19, [#allocation4], %s638_s21, %s638_s21, %s639_s22  }
   0xd   :  { %633 = dma.done.wait [#allocation4], 1024  }
   0xe   :  { %634 = vsyncadd [#allocation4], 4294966272  ;;  %v640_v0 = vmov 1   ;;  %v641_v1 = vmov 0   ;;  %v36_v2 = vld [vmem:[%s764_s1] sm:$0xff]  ;;  %v37_v3 = vld [vmem:[%s764_s1 + $0x8] sm:$0xff] }
   0xf   :  { %573 = vset.pattern.permute.xlu1 %v640_v0  ;;  %572 = vset.pattern.permute.xlu0 %v641_v1  ;;  %v686_v4 = vld [vmem:[#allocation3] sm:$0xff]  ;;  %v688_v5 = vld [vmem:[#allocation3 + $0x8] sm:$0xff]  ;;  %v690_v6 = vld [vmem:[#allocation3 + $0x30] sm:$0xff]  ;;  %s642_s0 = smov 1   ;;  %vm402_vm0 = vcmask 130048  }
  0x10   :  { %406 = vmatprep.subr.bf16.mxu0 %v641_v1  ;;  %81 = vperm.xlu1 %573, %v36_v2   ;;  %v692_v7 = vld [vmem:[#allocation3 + $0x38] sm:$0xff]  ;;  %v42_v8 = vadd.f32 %v688_v5, %v686_v4  ;;  %v696_v9 = vld [vmem:[#allocation3 + $0x10] sm:$0xff]  ;;  %v50_v11 = vmul.f32 %v686_v4, %v686_v4  ;;  %v51_v12 = vmul.f32 %v688_v5, %v688_v5  ;;  %v710_v16 = vld [vmem:[#allocation3 + $0x20] sm:$0xff] }
  0x11   :  { %70 = vperm.xlu0 %572, %v36_v2   ;;  %v698_v10 = vld [vmem:[#allocation3 + $0x18] sm:$0xff]  ;;  %v159_v13 = vadd.f32 %v692_v7, %v690_v6  ;;  %v167_v14 = vmul.f32 %v690_v6, %v690_v6  ;;  %v168_v15 = vmul.f32 %v692_v7, %v692_v7  ;;  %v712_v17 = vld [vmem:[#allocation3 + $0x28] sm:$0xff]  ;;  %v101_v19 = vmul.f32 %v696_v9, %v696_v9 }
  0x12   :  { %v93_v18 = vadd.f32 %v698_v10, %v696_v9  ;;  %v102_v20 = vmul.f32 %v698_v10, %v698_v10  ;;  %v43_v21 = vrot.slane %v42_v8, 4  ;;  %v52_v22 = vadd.f32 %v51_v12, %v50_v11 }
  0x13   :  { %v126_v23 = vadd.f32 %v712_v17, %v710_v16  ;;  %v134_v24 = vmul.f32 %v710_v16, %v710_v16  ;;  %v135_v25 = vmul.f32 %v712_v17, %v712_v17  ;;  %v160_v26 = vrot.slane %v159_v13, 4 }
  0x14   :  { %85 = vperm.xlu1 %573, %v37_v3   ;;  %v169_v27 = vadd.f32 %v168_v15, %v167_v14  ;;  %v94_v28 = vrot.slane %v93_v18, 4  ;;  %v103_v29 = vadd.f32 %v102_v20, %v101_v19  ;;  %v44_v30 = vadd.f32 %v43_v21, %v42_v8 }
  0x15   :  { %75 = vperm.xlu0 %572, %v37_v3   ;;  %v53_v31 = vrot.slane %v52_v22, 4  ;;  %v127_v32 = vrot.slane %v126_v23, 4  ;;  %v136_v33 = vadd.f32 %v135_v25, %v134_v24  ;;  %v161_v34 = vadd.f32 %v160_v26, %v159_v13 }
  0x16   :  { %v170_v35 = vrot.slane %v169_v27, 4  ;;  %v95_v36 = vadd.f32 %v94_v28, %v93_v18  ;;  %v104_v37 = vrot.slane %v103_v29, 4  ;;  %v45_v38 = vrot.slane %v44_v30, 2 }
  0x17   :  { %v54_v39 = vadd.f32 %v53_v31, %v52_v22  ;;  %v128_v40 = vadd.f32 %v127_v32, %v126_v23  ;;  %v137_v41 = vrot.slane %v136_v33, 4  ;;  %v162_v42 = vrot.slane %v161_v34, 2 }
  0x18   :  { %v171_v43 = vadd.f32 %v170_v35, %v169_v27  ;;  %v96_v44 = vrot.slane %v95_v36, 2  ;;  %v105_v45 = vadd.f32 %v104_v37, %v103_v29  ;;  %v46_v46 = vadd.f32 %v45_v38, %v44_v30 }
  0x19   :  { %v55_v47 = vrot.slane %v54_v39, 2  ;;  %v129_v48 = vrot.slane %v128_v40, 2  ;;  %v138_v49 = vadd.f32 %v137_v41, %v136_v33  ;;  %v163_v50 = vadd.f32 %v162_v42, %v161_v34 }
  0x1a   :  { %v172_v51 = vrot.slane %v171_v43, 2  ;;  %v97_v52 = vadd.f32 %v96_v44, %v95_v36  ;;  %v106_v53 = vrot.slane %v105_v45, 2  ;;  %v47_v54 = vrot.slane %v46_v46, 1 }
  0x1b   :  { %v56_v55 = vadd.f32 %v55_v47, %v54_v39  ;;  %v130_v56 = vadd.f32 %v129_v48, %v128_v40  ;;  %v139_v57 = vrot.slane %v138_v49, 2  ;;  %v164_v58 = vrot.slane %v163_v50, 1 }
  0x1c   :  { %v173_v59 = vadd.f32 %v172_v51, %v171_v43  ;;  %v98_v60 = vrot.slane %v97_v52, 1  ;;  %v107_v61 = vadd.f32 %v106_v53, %v105_v45  ;;  %v48_v62 = vadd.f32 %v47_v54, %v46_v46 }
  0x1d   :  { %v57_v63 = vrot.slane %v56_v55, 1  ;;  %v131_v0 = vrot.slane %v130_v56, 1  ;;  %v140_v2 = vadd.f32 %v139_v57, %v138_v49  ;;  %v165_v3 = vadd.f32 %v164_v58, %v163_v50 }
  0x1e   :  { %v174_v8 = vrot.slane %v173_v59, 1  ;;  %v99_v11 = vadd.f32 %v98_v60, %v97_v52  ;;  %v108_v12 = vrot.slane %v107_v61, 1  ;;  %v49_v13 = vmul.f32 0.25, %v48_v62 }
  0x1f   :  { %v58_v14 = vadd.f32 %v57_v63, %v56_v55  ;;  %v132_v15 = vadd.f32 %v131_v0, %v130_v56  ;;  %v141_v18 = vrot.slane %v140_v2, 1  ;;  %v166_v19 = vmul.f32 0.25, %v165_v3 }
  0x20   :  { %v175_v20 = vadd.f32 %v174_v8, %v173_v59  ;;  %v100_v21 = vmul.f32 0.25, %v99_v11  ;;  %v109_v22 = vadd.f32 %v108_v12, %v107_v61  ;;  %v60_v24 = vmul.f32 %v49_v13, %v49_v13 }
  0x21   :  { %v59_v23 = vmul.f32 0.25, %v58_v14  ;;  %v133_v25 = vmul.f32 0.25, %v132_v15  ;;  %v142_v26 = vadd.f32 %v141_v18, %v140_v2  ;;  %v177_v28 = vmul.f32 %v166_v19, %v166_v19 }
  0x22   :  { %v176_v27 = vmul.f32 0.25, %v175_v20  ;;  %v110_v29 = vmul.f32 0.25, %v109_v22  ;;  %v111_v30 = vmul.f32 %v100_v21, %v100_v21  ;;  %v179_v42 = vsub.f32 %v690_v6, %v166_v19 }
  0x23   :  { %v61_v31 = vsub.f32 %v59_v23, %v60_v24  ;;  %v143_v32 = vmul.f32 0.25, %v142_v26  ;;  %v144_v33 = vmul.f32 %v133_v25, %v133_v25  ;;  %v62_v44 = vsub.f32 %v686_v4, %v49_v13  ;;  %v462_v23 = vld [vmem:[%s767_s4] ss:$0 sm:$0xff] }
  0x24   :  { %v178_v34 = vsub.f32 %v176_v27, %v177_v28  ;;  %v112_v35 = vsub.f32 %v110_v29, %v111_v30  ;;  %v113_v45 = vsub.f32 %v696_v9, %v100_v21  ;;  %v63_v47 = vsub.f32 %v688_v5, %v49_v13  ;;  %v336_v28 = vld [vmem:[%s766_s3] sm:$0xff] }
  0x25   :  { %v64_v36 = vadd.f32 1e-06, %v61_v31  ;;  %v145_v37 = vsub.f32 %v143_v32, %v144_v33  ;;  %v146_v48 = vsub.f32 %v710_v16, %v133_v25  ;;  %v114_v51 = vsub.f32 %v698_v10, %v100_v21 }
  0x26   :  { %v181_v38 = vadd.f32 1e-06, %v178_v34  ;;  %v115_v39 = vadd.f32 1e-06, %v112_v35  ;;  %v147_v52 = vsub.f32 %v712_v17, %v133_v25  ;;  %v180_v53 = vsub.f32 %v692_v7, %v166_v19  ;;  %v463_v35 = vld [vmem:[%s767_s4 + $0x1] ss:$0 sm:$0xff] }
  0x27   :  { %585 = vrsqrt.f32 %v64_v36  ;;  %v148_v40 = vadd.f32 1e-06, %v145_v37  ;;  %v317_v37 = vld [vmem:[%s765_s2] sm:$0xff]  ;;  %s643_s2 = smov [#allocation6]  }
  0x28   :  { %587 = vrsqrt.f32 %v181_v38  ;;  %s453_s3 = sshll.u32 %s643_s2, 4  ;;  %s454_s3 = int_to_ptr.vmem [resolvable:$true] %s453_s3 }
  0x29   :  { %589 = vrsqrt.f32 %v115_v39  ;;  %v483_v39 = vcombine.high %v317_v37, %v317_v37  ;;  %s613_s4 = scalar_lea.vmem %s454_s3, 128  ;;  %p618_p6 = scmp.lt.s32.totalorder %s454_s3, %s454_s3 }
  0x2a   :  { %591 = vrsqrt.f32 %v148_v40  ;;  %p614_p5 = scmp.ne.s32.totalorder %s454_s3, %s613_s4  ;;  %p619_p7 = scmp.lt.s32.totalorder %s613_s4, %s613_s4 }
  0x2b   :  { %493 = vmatprep.mubr.msk.bf16.mxu0 %vm402_vm0, %v483_v39 }
  0x2c   :  { %p620_p8 = por %p619_p7, %p618_p6 }
  0x2e   :  { %p621_p9 = pnand %p620_p8, %p614_p5 }
  0x34   :  { %v586_v41 = vpop.eup %585 }
  0x35   :  { %v588_v43 = vpop.eup %587  ;;  %v66_v54 = vmul.f32 %v586_v41, %v62_v44  ;;  %v67_v4 = vmul.f32 %v586_v41, %v63_v47 }
  0x36   :  { %v590_v46 = vpop.eup %589  ;;  %v183_v50 = vmul.f32 %v588_v43, %v179_v42  ;;  %v184_v5 = vmul.f32 %v588_v43, %v180_v53 }
  0x37   :  { %v592_v49 = vpop.eup %591  ;;  %v117_v6 = vmul.f32 %v590_v46, %v113_v45  ;;  %v118_v58 = vmul.f32 %v590_v46, %v114_v51 }
  0x38   :  { %v150_v57 = vmul.f32 %v592_v49, %v146_v48  ;;  %v151_v59 = vmul.f32 %v592_v49, %v147_v52 }
  0x8b   :  { %v82_v55 = vpop.permute.xlu1 %81 }
  0x8c   :  { %v71_v56 = vpop.permute.xlu0 %70 }
  0x8d   :  { %v185_v9 = vmul.f32 %v183_v50, %v71_v56  ;;  %v78_v60 = vmul.f32 %v71_v56, %v66_v54  ;;  %v119_v16 = vmul.f32 %v117_v6, %v71_v56  ;;  %v152_v63 = vmul.f32 %v150_v57, %v71_v56 }
  0x8f   :  { %v187_v61 = vadd.f32 %v185_v9, %v82_v55  ;;  %v88_v7 = vadd.f32 %v82_v55, %v78_v60  ;;  %v86_v3 = vpop.permute.xlu1 %85  ;;  %v121_v8 = vadd.f32 %v119_v16, %v82_v55  ;;  %v154_v15 = vadd.f32 %v152_v63, %v82_v55 }
  0x90   :  { %v76_v62 = vpop.permute.xlu0 %75 }
  0x91   :  { %v79_v10 = vmul.f32 %v76_v62, %v67_v4  ;;  %v120_v0 = vmul.f32 %v118_v58, %v76_v62  ;;  %v153_v17 = vmul.f32 %v151_v59, %v76_v62  ;;  %v186_v2 = vmul.f32 %v184_v5, %v76_v62  ;;  %199 = vrot.lane.b32.xlu0 %v187_v61, %s642_s0 }
  0x92   :  { %v482_v58 = vcombine.low %v317_v37, %v317_v37 }
  0x93   :  { %v89_v11 = vadd.f32 %v86_v3, %v79_v10  ;;  %v188_v12 = vadd.f32 %v186_v2, %v86_v3  ;;  %v122_v13 = vadd.f32 %v120_v0, %v86_v3  ;;  %v155_v14 = vadd.f32 %v153_v17, %v86_v3 }
  0x95   :  { %v535_v18 = vpack.c.bf16 %v89_v11, %v88_v7  ;;  %189 = vrot.lane.b32.xlu0 %v121_v8, %s642_s0  ;;  %201 = vrot.lane.b32.xlu1 %v188_v12, %s642_s0  ;;  %v555_v19 = vpack.c.bf16 %v188_v12, %v187_v61  ;;  %v540_v20 = vpack.c.bf16 %v122_v13, %v121_v8 }
  0x96   :  { %v550_v21 = vpack.c.bf16 %v155_v14, %v154_v15 }
  0x97   :  { %560 = vst [vmem:[#allocation2 + $0x20] sm:$0xff] %v535_v18   ;;  %564 = vst [vmem:[#allocation2 + $0x40] sm:$0xff] %v555_v19  }
  0x98   :  { %561 = vst [vmem:[#allocation2 + $0x28] sm:$0xff] %v540_v20   ;;  %563 = vst [vmem:[#allocation2 + $0x38] sm:$0xff] %v550_v21  }
  0x99   :  { %241 = vrot.lane.b32.xlu0 %v187_v61, %s639_s22  ;;  %191 = vrot.lane.b32.xlu1 %v122_v13, %s642_s0 }
  0x9d   :  { %225 = vrot.lane.b32.xlu0 %v154_v15, %s639_s22  ;;  %243 = vrot.lane.b32.xlu1 %v188_v12, %s639_s22 }
  0x9e   :  { %v577_v50 = vld [vmem:[#allocation2 + $0x20] sm:$0xff]  }
  0x9f   :  { %v574_v22 = vld [vmem:[#allocation2 + $0x38] sm:$0xff]   ;;  %v576_v49 = vld [vmem:[#allocation2 + $0x28] sm:$0xff]   ;;  %v582_v9 = vld [vmem:[#allocation2 + $0x40] sm:$0xff]  }
  0xa0   :  { %407 = vmatpush1.bf16.msra.mxu0 %v574_v22 }
  0xa1   :  { %227 = vrot.lane.b32.xlu1 %v155_v14, %s639_s22  ;;  %408 = vmatprep.subr.bf16.mxu0 %v641_v1 }
 0x103   :  { %v200_v24 = vpop.permute.xlu0 %199 }
 0x104   :  { %v203_v25 = vmul.f32 %v462_v23, %v200_v24 }
 0x106   :  { %205 = vrot.lane.b32.xlu0 %v203_v25, %s639_s22 }
 0x107   :  { %v202_v26 = vpop.permute.xlu1 %201  ;;  %v190_v27 = vpop.permute.xlu0 %189 }
 0x108   :  { %v204_v29 = vmul.f32 %v462_v23, %v202_v26  ;;  %v197_v33 = vmul.f32 %v462_v23, %v190_v27 }
 0x10a   :  { %v545_v30 = vpack.c.bf16 %v204_v29, %v203_v25  ;;  %207 = vrot.lane.b32.xlu1 %v204_v29, %s639_s22  ;;  %339 = vperm.xlu0 %572, %v336_v28  }
 0x10b   :  { %v192_v31 = vpop.permute.xlu1 %191  ;;  %v242_v32 = vpop.permute.xlu0 %241 }
 0x10c   :  { %562 = vst [vmem:[#allocation2 + $0x30] sm:$0xff] %v545_v30   ;;  %v198_v34 = vmul.f32 %v462_v23, %v192_v31  ;;  %v245_v40 = vmul.f32 %v463_v35, %v242_v32 }
 0x10e   :  { %v530_v36 = vpack.c.bf16 %v198_v34, %v197_v33 }
 0x10f   :  { %v244_v38 = vpop.permute.xlu1 %243  ;;  %v226_v42 = vpop.permute.xlu0 %225 }
 0x110   :  { %559 = vst [vmem:[#allocation2 + $0x18] sm:$0xff] %v530_v36   ;;  %v246_v41 = vmul.f32 %v463_v35, %v244_v38  ;;  %v229_v46 = vmul.f32 %v463_v35, %v226_v42 }
 0x112   :  { %v525_v43 = vpack.c.bf16 %v246_v41, %v245_v40 }
 0x113   :  { %v228_v44 = vpop.permute.xlu1 %227  ;;  %v575_v45 = vld [vmem:[#allocation2 + $0x30] sm:$0xff]  }
 0x114   :  { %558 = vst [vmem:[#allocation2 + $0x10] sm:$0xff] %v525_v43   ;;  %v230_v47 = vmul.f32 %v463_v35, %v228_v44  ;;  %409 = vmatpush1.bf16.msra.mxu0 %v575_v45 }
 0x115   :  { %410 = vmatprep.subr.bf16.mxu0 %v641_v1 }
 0x116   :  { %v520_v48 = vpack.c.bf16 %v230_v47, %v229_v46 }
 0x117   :  { %v578_v51 = vld [vmem:[#allocation2 + $0x18] sm:$0xff]  }
 0x118   :  { %557 = vst [vmem:[#allocation2 + $0x8] sm:$0xff] %v520_v48   ;;  %411 = vmatpush1.bf16.msra.mxu0 %v576_v49 }
 0x119   :  { %412 = vmatprep.subr.bf16.mxu0 %v641_v1 }
 0x11b   :  { %v579_v52 = vld [vmem:[#allocation2 + $0x10] sm:$0xff]  }
 0x11c   :  { %413 = vmatpush1.bf16.msra.mxu0 %v577_v50 }
 0x11d   :  { %414 = vmatprep.subr.bf16.mxu0 %v641_v1 }
 0x11f   :  { %v580_v53 = vld [vmem:[#allocation2 + $0x8] sm:$0xff]  }
 0x120   :  { %415 = vmatpush1.bf16.msra.mxu0 %v578_v51 }
 0x121   :  { %416 = vmatprep.subr.bf16.mxu0 %v641_v1 }
 0x124   :  { %417 = vmatpush1.bf16.msra.mxu0 %v579_v52 }
 0x125   :  { %418 = vmatprep.subr.bf16.mxu0 %v641_v1 }
 0x128   :  { %419 = vmatpush1.bf16.msra.mxu0 %v580_v53 }
 0x129   :  { %420 = vmatprep.subr.bf16.mxu0 %v641_v1 }
 0x178   :  { %v206_v54 = vpop.permute.xlu0 %205 }
 0x179   :  { %v213_v55 = vmul.f32 %v463_v35, %v206_v54 }
 0x17c   :  { %v208_v6 = vpop.permute.xlu1 %207 }
 0x17d   :  { %v214_v56 = vmul.f32 %v463_v35, %v208_v6 }
 0x17f   :  { %v515_v4 = vpack.c.bf16 %v214_v56, %v213_v55 }
 0x181   :  { %516 = vst [vmem:[#allocation2] sm:$0xff] %v515_v4  }
 0x185   :  { %v340_v59 = vpop.permute.xlu0 %339 }
 0x188   :  { %v581_v57 = vld [vmem:[#allocation2] sm:$0xff]  }
 0x189   :  { %421 = vmatpush1.bf16.msra.mxu0 %v581_v57 }
 0x18a   :  { %436 = vmatprep.subr.bf16.mxu0 %v641_v1 }
 0x18d   :  { %437 = vmatpush2.bf16.msra.mxu0 %v582_v9 }
 0x190   :  { %439 = vmatmul.mubr.bf16.vlgmr.msra.gmra.mxu0 %v482_v58 }
 0x250   :  { %v440_v5 = vpop.f32.mrf.mxu0 }
 0x251   :  { %v441_v60 = vadd.f32 %v440_v5, %v340_v59 }
 0x252   :  { %v442_v16 = vpop.f32.mrf.mxu0 }
 0x253   :  { %446 = vst [vmem:[#allocation6] sm:$0xff] %v441_v60 }
 0x254   :  { %v443_v61 = vpop.f32.mrf.mxu0 }
 0x255   :  { %624 = shalt.err (!%p621_p9)
}
 0x256   :  { %456 = dma.vmem_to_hbm [thread:$0]  %s454_s3, 128, %s768_s5, [#allocation5]   ;;  %v444_v1 = vpop.f32.mrf.mxu0 }
 0x257   :  { %635 = dma.done.wait [#allocation5], 128  }
 0x258   :  { %636 = vsyncadd [#allocation5], 4294967168 }
 0x259   :  { %460 = vsyncpa [#allocation4], 1 }
 0x25a   :  { %461 = vsyncpa [#allocation5], 1 }

</bundles_post_ra>
